<compile_context>
chip_gen: v7x
topology: tpu7x:2x2x1
jax: 0.10.0
libtpu: 0.0.40
codegen_flags: <defaults>
</compile_context>

<pallas_src>
import math

import jax
import jax.numpy as jnp
from jax.experimental import pallas as pl
from jax.experimental.pallas import tpu as pltpu

# ---------------- small synthetic BERT config ----------------
VOCAB = 100
TYPE_VOCAB = 2
MAX_POS = 32
HIDDEN = 32
HEADS = 2
HEAD_DIM = HIDDEN // HEADS
INTER = 64
LAYERS = 2
LN_EPS = 1e-12           # BERT LayerNorm eps


# ---------------- in-kernel helpers ----------------
def _layer_norm(x, g, b):
    # Independent row reductions (mean and mean-of-squares) -> shorter XLU chain.
    mu = jnp.mean(x, axis=-1, keepdims=True)
    ms = jnp.mean(x * x, axis=-1, keepdims=True)
    var = jnp.maximum(ms - mu * mu, 0.0)
    inv = jax.lax.rsqrt(var + LN_EPS) * g          # gamma folded into the scale
    return (x - mu) * inv + b


def _gelu(x):
    # TODO(synk): HF BERT uses exact erf-GELU; tanh approximation kept for
    # Mosaic-safe lowering (numerically very close; fp32 on VPU/EUP).
    return 0.5 * x * (1.0 + jnp.tanh(0.7978845608028654 * (x + 0.044715 * x * x * x)))


# ---------------- fused encoder kernel ----------------
def _encoder_kernel(emb_ref, mask_ref, embln_ref,
                    wqkv_ref, bqkv_ref, wo_ref, bo_ref, lnp_ref,
                    wi_ref, bi_ref, wd_ref, bd_ref,
                    o_ref, qkv_buf, ctx_buf):
    # One grid step processes one batch CHUNK (CB elements) through the stack.
    CB, S, H = emb_ref.shape
    R = CB * S                      # flattened rows of the chunk
    N, D = HEADS, HEAD_DIM
    G = N * CB                      # attention batch axis (head-major ordering)

    # --- embeddings (word+type+pos pre-summed wrapper-side) + LayerNorm ---
    x = _layer_norm(emb_ref[...].reshape(R, H), embln_ref[0:1, :], embln_ref[1:2, :])

    # additive attention mask, built once, head-major: g = h*CB + c  -> (G,1,S)
    am = (1.0 - mask_ref[...]) * -1e9                              # (CB,1,S) fp32
    am = jnp.broadcast_to(am.reshape(1, CB, 1, S), (N, CB, 1, S)).reshape(G, 1, S)

    for l in range(LAYERS):
        xb = x.astype(jnp.bfloat16)

        # ---- fused QKV projection: one (R,H)@(H,3H) MXU push ----
        # (1/sqrt(D) softmax scale is folded into the Q columns at init.)
        qkv_buf[...] = jnp.dot(xb, wqkv_ref[l],
                               preferred_element_type=jnp.float32) + bqkv_ref[l]

        def head_stack(base):
            # gather per-head (CB,S,D) slabs from the scratch ref -> (G,S,D)
            hs = [qkv_buf[:, base + h * D: base + (h + 1) * D].reshape(CB, S, D)
                  for h in range(N)]
            return jnp.stack(hs, axis=0).reshape(G, S, D).astype(jnp.bfloat16)

        q = head_stack(0)
        k = head_stack(H)
        v = head_stack(2 * H)

        # ---- attention: heads batched on the major axis ----
        scores = jnp.einsum('gqd,gkd->gqk', q, k,
                            preferred_element_type=jnp.float32)    # (G,S,S) fp32
        scores = scores + am
        scores = scores - jnp.max(scores, axis=-1, keepdims=True)
        p = jnp.exp(scores)
        p = p * pl.reciprocal(jnp.sum(p, axis=-1, keepdims=True), approx=True)

        ctx = jnp.einsum('gqk,gkd->gqd', p.astype(jnp.bfloat16), v,
                         preferred_element_type=jnp.float32)       # (G,S,D) fp32

        # merge heads back into the lane dim via scratch, then ONE (R,H)@(H,H)
        ctx = ctx.reshape(N, CB, S, D)
        for h in range(N):
            ctx_buf[:, h * D:(h + 1) * D] = ctx[h].reshape(R, D)

        attn = jnp.dot(ctx_buf[...].astype(jnp.bfloat16), wo_ref[l],
                       preferred_element_type=jnp.float32) + bo_ref[l]
        h1 = _layer_norm(attn + x, lnp_ref[l, 0:1, :], lnp_ref[l, 1:2, :])

        # ---- feed-forward ----
        ff = jnp.dot(h1.astype(jnp.bfloat16), wi_ref[l],
                     preferred_element_type=jnp.float32) + bi_ref[l]
        ff = _gelu(ff)
        ff = jnp.dot(ff.astype(jnp.bfloat16), wd_ref[l],
                     preferred_element_type=jnp.float32) + bd_ref[l]
        x = _layer_norm(ff + h1, lnp_ref[l, 2:3, :], lnp_ref[l, 3:4, :])

    # Store kept at natural (CB,S,H) layout (leading-dim split only); the
    # lane-dense (CB,S*H) slab was skipped to avoid a minor-dim relayout at
    # this toy size (output is ~2 KiB total).
    o_ref[...] = x.reshape(CB, S, H)


# ---------------- pallas_call wrapper ----------------
def _full_spec(arr):
    n = arr.ndim
    return pl.BlockSpec(arr.shape, lambda c, _n=n: (0,) * _n)


_WEIGHT_ORDER = ("wqkv", "bqkv", "wo", "bo", "lnp", "wi", "bi", "wd", "bd")


def _num_chunks(batch):
    # v7x has 2 TensorCores: give each a batch chunk.  v5e/v6e are single-core,
    # where extra grid steps are pure overhead -> collapse the whole batch.
    try:
        kind = jax.devices()[0].device_kind.lower()
    except Exception:
        kind = ""
    return 2 if ("v7" in kind and batch % 2 == 0) else 1


def bert_encoder(emb, mask3, params):
    B, S, H = emb.shape
    num_chunks = _num_chunks(B)
    assert B % num_chunks == 0
    CB = B // num_chunks
    R = CB * S

    weights = [params[k] for k in _WEIGHT_ORDER]
    args = [emb, mask3, params["emb_ln"], *weights]
    in_specs = [
        pl.BlockSpec((CB, S, H), lambda c: (c, 0, 0)),   # pre-summed embeddings
        pl.BlockSpec((CB, 1, S), lambda c: (c, 0, 0)),   # compact 0/1 attention mask
        _full_spec(params["emb_ln"]),
    ] + [_full_spec(w) for w in weights]                 # VMEM-resident weights

    return pl.pallas_call(
        _encoder_kernel,
        out_shape=jax.ShapeDtypeStruct((B, S, H), jnp.float32),
        grid=(num_chunks,),
        in_specs=in_specs,
        out_specs=pl.BlockSpec((CB, S, H), lambda c: (c, 0, 0)),
        scratch_shapes=[pltpu.VMEM((R, 3 * H), jnp.float32),   # fused QKV
                        pltpu.VMEM((R, H), jnp.float32)],      # merged-head ctx
        compiler_params=pltpu.CompilerParams(dimension_semantics=("parallel",)),
    )(*args)


# ---------------- parameter init (deterministic, synthetic) ----------------
def init_params(key):
    keys = iter(jax.random.split(key, 32))

    def nrm(shape):
        return 0.02 * jax.random.normal(next(keys), shape, jnp.float32)

    bf16 = jnp.bfloat16
    L, H, I = LAYERS, HIDDEN, INTER
    scale = 1.0 / math.sqrt(HEAD_DIM)

    # fused QKV weight/bias; softmax 1/sqrt(D) folded into the Q columns
    wqkv = jnp.concatenate([nrm((L, H, H)) * scale, nrm((L, H, H)), nrm((L, H, H))], axis=-1)
    bqkv = jnp.concatenate([nrm((L, 1, H)) * scale, nrm((L, 1, H)), nrm((L, 1, H))], axis=-1)
    # LN params packed: rows = [g_attn, b_attn, g_ffn, b_ffn]
    lnp = jnp.stack([jnp.ones((L, H)), jnp.zeros((L, H)),
                     jnp.ones((L, H)), jnp.zeros((L, H))], axis=1)        # (L,4,H)

    params = {
        "word_emb": nrm((VOCAB, H)),
        "pos_emb": nrm((MAX_POS, H)),
        "type_emb": nrm((TYPE_VOCAB, H)),
        "emb_ln": jnp.concatenate([jnp.ones((1, H)), jnp.zeros((1, H))], axis=0),  # (2,H)
        "wqkv": wqkv.astype(bf16), "bqkv": bqkv,
        "wo": nrm((L, H, H)).astype(bf16), "bo": nrm((L, 1, H)),
        "lnp": lnp,
        "wi": nrm((L, H, I)).astype(bf16), "bi": nrm((L, 1, I)),
        "wd": nrm((L, I, H)).astype(bf16), "bd": nrm((L, 1, H)),
    }
    return params


# ---------------- forward (mirrors BertTextEncoder.forward) ----------------
@jax.jit
def bert_text_encoder_forward(text, params):
    # text: (B, 3, S) -- channel 0: input_ids, 1: attention_mask, 2: token_type_ids
    input_ids = text[:, 0, :].astype(jnp.int32)
    attention_mask = text[:, 1, :].astype(jnp.float32)
    token_type_ids = text[:, 2, :].astype(jnp.int32)
    B, S = input_ids.shape

    # embedding gathers are wrapper-side glue; pre-sum word+type+pos (fuses into
    # the gather) so the kernel starts at the embedding LayerNorm
    emb = (jnp.take(params["word_emb"], input_ids, axis=0)
           + jnp.take(params["type_emb"], token_type_ids, axis=0)
           + params["pos_emb"][:S][None, :, :])                     # (B, S, H)
    mask3 = attention_mask[:, None, :]                              # (B, 1, S) raw 0/1

    return bert_encoder(emb, mask3, params)                         # (B, S, H)


# TODO(synk): tokenizer (host-side string processing) and pretrained checkpoint
# loading have no Pallas equivalent; synthetic deterministic weights are used.

if __name__ == "__main__":
    key = jax.random.PRNGKey(0)
    pkey, ikey = jax.random.split(key)
    params = init_params(pkey)

    B, S = 2, 8
    input_ids = jax.random.randint(ikey, (B, S), 0, VOCAB, dtype=jnp.int32)
    attention_mask = jnp.array([[1, 1, 1, 1, 1, 1, 1, 1],
                                [1, 1, 1, 1, 1, 0, 0, 0]], dtype=jnp.int32)
    token_type_ids = jnp.array([[0, 0, 0, 0, 1, 1, 1, 1],
                                [0, 0, 0, 0, 0, 0, 0, 0]], dtype=jnp.int32)
    text = jnp.stack([input_ids, attention_mask, token_type_ids], axis=1)  # (B, 3, S)

    out = bert_text_encoder_forward(text, params)
    out = jax.block_until_ready(out)
    assert out.shape == (B, S, HIDDEN)
    assert jnp.all(jnp.isfinite(out))
    print("KERNEL_OK")
</pallas_src>

<mosaic_0001>
module attributes {stable_mosaic.version = 11 : i64} {
  func.func @_encoder_kernel(%arg0: i32, %arg1: memref<2x8x32xf32, #tpu.memory_space<vmem>>, %arg2: memref<2x1x8xf32, #tpu.memory_space<vmem>>, %arg3: memref<2x32xf32, #tpu.memory_space<vmem>>, %arg4: memref<2x32x96xbf16, #tpu.memory_space<vmem>>, %arg5: memref<2x1x96xf32, #tpu.memory_space<vmem>>, %arg6: memref<2x32x32xbf16, #tpu.memory_space<vmem>>, %arg7: memref<2x1x32xf32, #tpu.memory_space<vmem>>, %arg8: memref<2x4x32xf32, #tpu.memory_space<vmem>>, %arg9: memref<2x32x64xbf16, #tpu.memory_space<vmem>>, %arg10: memref<2x1x64xf32, #tpu.memory_space<vmem>>, %arg11: memref<2x64x32xbf16, #tpu.memory_space<vmem>>, %arg12: memref<2x1x32xf32, #tpu.memory_space<vmem>>, %arg13: memref<2x8x32xf32, #tpu.memory_space<vmem>>, %arg14: memref<16x96xf32, #tpu.memory_space<vmem>>, %arg15: memref<16x32xf32, #tpu.memory_space<vmem>>) attributes {dimension_semantics = [#tpu.dimension_semantics<parallel>], iteration_bounds = array<i64: 1>, scalar_prefetch = 0 : i64, scratch_operands = 2 : i64, tpu.core_type = #tpu.core_type<tc>, window_params = [{transform_indices = @transform_0, window_bounds = array<i64: 2, 8, 32>}, {transform_indices = @transform_1, window_bounds = array<i64: 2, 1, 8>}, {pipeline_mode = #tpu.pipeline_mode<synchronous>, transform_indices = @transform_2, window_bounds = array<i64: 2, 32>}, {pipeline_mode = #tpu.pipeline_mode<synchronous>, transform_indices = @transform_3, window_bounds = array<i64: 2, 32, 96>}, {pipeline_mode = #tpu.pipeline_mode<synchronous>, transform_indices = @transform_4, window_bounds = array<i64: 2, 1, 96>}, {pipeline_mode = #tpu.pipeline_mode<synchronous>, transform_indices = @transform_5, window_bounds = array<i64: 2, 32, 32>}, {pipeline_mode = #tpu.pipeline_mode<synchronous>, transform_indices = @transform_6, window_bounds = array<i64: 2, 1, 32>}, {pipeline_mode = #tpu.pipeline_mode<synchronous>, transform_indices = @transform_7, window_bounds = array<i64: 2, 4, 32>}, {pipeline_mode = #tpu.pipeline_mode<synchronous>, transform_indices = @transform_8, window_bounds = array<i64: 2, 32, 64>}, {pipeline_mode = #tpu.pipeline_mode<synchronous>, transform_indices = @transform_9, window_bounds = array<i64: 2, 1, 64>}, {pipeline_mode = #tpu.pipeline_mode<synchronous>, transform_indices = @transform_10, window_bounds = array<i64: 2, 64, 32>}, {pipeline_mode = #tpu.pipeline_mode<synchronous>, transform_indices = @transform_11, window_bounds = array<i64: 2, 1, 32>}, {transform_indices = @transform_12, window_bounds = array<i64: 2, 8, 32>}]} {
    %c0 = arith.constant 0 : index
    %c0_0 = arith.constant 0 : index
    %c0_1 = arith.constant 0 : index
    %0 = vector.load %arg1[%c0, %c0_0, %c0_1] : memref<2x8x32xf32, #tpu.memory_space<vmem>>, vector<2x8x32xf32>
    %1 = vector.shape_cast %0 : vector<2x8x32xf32> to vector<16x32xf32>
    %c0_2 = arith.constant 0 : index
    %c0_3 = arith.constant 0 : index
    %2 = vector.load %arg3[%c0_2, %c0_3] : memref<2x32xf32, #tpu.memory_space<vmem>>, vector<1x32xf32>
    %c1 = arith.constant 1 : index
    %c0_4 = arith.constant 0 : index
    %3 = vector.load %arg3[%c1, %c0_4] : memref<2x32xf32, #tpu.memory_space<vmem>>, vector<1x32xf32>
    %cst = arith.constant dense<0.000000e+00> : vector<16xf32>
    %4 = vector.multi_reduction <add>, %1, %cst [1] : vector<16x32xf32> to vector<16xf32>
    %5 = vector.shape_cast %4 : vector<16xf32> to vector<16x1xf32>
    %cst_5 = arith.constant 3.200000e+01 : f32
    %6 = vector.broadcast %cst_5 : f32 to vector<16x1xf32>
    %7 = arith.divf %5, %6 : vector<16x1xf32>
    %8 = arith.mulf %1, %1 : vector<16x32xf32>
    %cst_6 = arith.constant dense<0.000000e+00> : vector<16xf32>
    %9 = vector.multi_reduction <add>, %8, %cst_6 [1] : vector<16x32xf32> to vector<16xf32>
    %10 = vector.shape_cast %9 : vector<16xf32> to vector<16x1xf32>
    %cst_7 = arith.constant 3.200000e+01 : f32
    %11 = vector.broadcast %cst_7 : f32 to vector<16x1xf32>
    %12 = arith.divf %10, %11 : vector<16x1xf32>
    %13 = arith.mulf %7, %7 : vector<16x1xf32>
    %14 = arith.subf %12, %13 : vector<16x1xf32>
    %cst_8 = arith.constant 0.000000e+00 : f32
    %15 = vector.broadcast %cst_8 : f32 to vector<16x1xf32>
    %16 = arith.maximumf %14, %15 : vector<16x1xf32>
    %cst_9 = arith.constant 9.99999996E-13 : f32
    %17 = vector.broadcast %cst_9 : f32 to vector<16x1xf32>
    %18 = arith.addf %16, %17 : vector<16x1xf32>
    %19 = math.rsqrt %18 : vector<16x1xf32>
    %20 = vector.broadcast %19 : vector<16x1xf32> to vector<16x32xf32>
    %21 = vector.broadcast %2 : vector<1x32xf32> to vector<16x32xf32>
    %22 = arith.mulf %20, %21 : vector<16x32xf32>
    %23 = vector.broadcast %7 : vector<16x1xf32> to vector<16x32xf32>
    %24 = arith.subf %1, %23 : vector<16x32xf32>
    %25 = arith.mulf %24, %22 : vector<16x32xf32>
    %26 = vector.broadcast %3 : vector<1x32xf32> to vector<16x32xf32>
    %27 = arith.addf %25, %26 : vector<16x32xf32>
    %c0_10 = arith.constant 0 : index
    %c0_11 = arith.constant 0 : index
    %c0_12 = arith.constant 0 : index
    %28 = vector.load %arg2[%c0_10, %c0_11, %c0_12] : memref<2x1x8xf32, #tpu.memory_space<vmem>>, vector<2x1x8xf32>
    %cst_13 = arith.constant 1.000000e+00 : f32
    %29 = vector.broadcast %cst_13 : f32 to vector<2x1x8xf32>
    %30 = arith.subf %29, %28 : vector<2x1x8xf32>
    %cst_14 = arith.constant -1.000000e+09 : f32
    %31 = vector.broadcast %cst_14 : f32 to vector<2x1x8xf32>
    %32 = arith.mulf %30, %31 : vector<2x1x8xf32>
    %33 = vector.shape_cast %32 : vector<2x1x8xf32> to vector<1x2x1x8xf32>
    %34 = vector.shape_cast %33 : vector<1x2x1x8xf32> to vector<1x2x1x8xf32>
    %35 = vector.broadcast %34 : vector<1x2x1x8xf32> to vector<2x2x1x8xf32>
    %36 = vector.shape_cast %35 : vector<2x2x1x8xf32> to vector<4x1x8xf32>
    %37 = arith.truncf %27 : vector<16x32xf32> to vector<16x32xbf16>
    %c0_15 = arith.constant 0 : index
    %c0_16 = arith.constant 0 : index
    %c0_17 = arith.constant 0 : index
    %38 = vector.load %arg4[%c0_15, %c0_16, %c0_17] : memref<2x32x96xbf16, #tpu.memory_space<vmem>>, vector<1x32x96xbf16>
    %39 = vector.shape_cast %38 : vector<1x32x96xbf16> to vector<32x96xbf16>
    %cst_18 = arith.constant dense<0.000000e+00> : vector<16x96xf32>
    %40 = tpu.matmul %37, %39, %cst_18 {dimension_numbers = #tpu.dot_dimension_numbers<[1], [0], [0], [1], [0, 0, 1, 1], [], []>} : vector<16x32xbf16>, vector<32x96xbf16>, vector<16x96xf32> -> vector<16x96xf32>
    %c0_19 = arith.constant 0 : index
    %c0_20 = arith.constant 0 : index
    %c0_21 = arith.constant 0 : index
    %41 = vector.load %arg5[%c0_19, %c0_20, %c0_21] : memref<2x1x96xf32, #tpu.memory_space<vmem>>, vector<1x1x96xf32>
    %42 = vector.shape_cast %41 : vector<1x1x96xf32> to vector<1x96xf32>
    %43 = vector.broadcast %42 : vector<1x96xf32> to vector<16x96xf32>
    %44 = arith.addf %40, %43 : vector<16x96xf32>
    %c0_22 = arith.constant 0 : index
    %c0_23 = arith.constant 0 : index
    %45 = vector.load %arg14[%c0_22, %c0_23] : memref<16x96xf32, #tpu.memory_space<vmem>>, vector<16x96xf32>
    tpu.vector_store %arg14[%c0_22, %c0_23], %44 {strides = array<i32>} : memref<16x96xf32, #tpu.memory_space<vmem>>, vector<16x96xf32>,
    %c0_24 = arith.constant 0 : index
    %c0_25 = arith.constant 0 : index
    %46 = vector.load %arg14[%c0_24, %c0_25] : memref<16x96xf32, #tpu.memory_space<vmem>>, vector<16x16xf32>
    %47 = vector.shape_cast %46 : vector<16x16xf32> to vector<2x8x16xf32>
    %c0_26 = arith.constant 0 : index
    %c16 = arith.constant 16 : index
    %48 = vector.load %arg14[%c0_26, %c16] : memref<16x96xf32, #tpu.memory_space<vmem>>, vector<16x16xf32>
    %49 = vector.shape_cast %48 : vector<16x16xf32> to vector<2x8x16xf32>
    %50 = vector.shape_cast %47 : vector<2x8x16xf32> to vector<1x2x8x16xf32>
    %51 = vector.shape_cast %49 : vector<2x8x16xf32> to vector<1x2x8x16xf32>
    %52 = tpu.concatenate %50, %51 in 0 : vector<1x2x8x16xf32>, vector<1x2x8x16xf32> -> vector<2x2x8x16xf32>
    %53 = vector.shape_cast %52 : vector<2x2x8x16xf32> to vector<4x8x16xf32>
    %54 = arith.truncf %53 : vector<4x8x16xf32> to vector<4x8x16xbf16>
    %c0_27 = arith.constant 0 : index
    %c32 = arith.constant 32 : index
    %55 = vector.load %arg14[%c0_27, %c32] : memref<16x96xf32, #tpu.memory_space<vmem>>, vector<16x16xf32>
    %56 = vector.shape_cast %55 : vector<16x16xf32> to vector<2x8x16xf32>
    %c0_28 = arith.constant 0 : index
    %c48 = arith.constant 48 : index
    %57 = vector.load %arg14[%c0_28, %c48] : memref<16x96xf32, #tpu.memory_space<vmem>>, vector<16x16xf32>
    %58 = vector.shape_cast %57 : vector<16x16xf32> to vector<2x8x16xf32>
    %59 = vector.shape_cast %56 : vector<2x8x16xf32> to vector<1x2x8x16xf32>
    %60 = vector.shape_cast %58 : vector<2x8x16xf32> to vector<1x2x8x16xf32>
    %61 = tpu.concatenate %59, %60 in 0 : vector<1x2x8x16xf32>, vector<1x2x8x16xf32> -> vector<2x2x8x16xf32>
    %62 = vector.shape_cast %61 : vector<2x2x8x16xf32> to vector<4x8x16xf32>
    %63 = arith.truncf %62 : vector<4x8x16xf32> to vector<4x8x16xbf16>
    %c0_29 = arith.constant 0 : index
    %c64 = arith.constant 64 : index
    %64 = vector.load %arg14[%c0_29, %c64] : memref<16x96xf32, #tpu.memory_space<vmem>>, vector<16x16xf32>
    %65 = vector.shape_cast %64 : vector<16x16xf32> to vector<2x8x16xf32>
    %c0_30 = arith.constant 0 : index
    %c80 = arith.constant 80 : index
    %66 = vector.load %arg14[%c0_30, %c80] : memref<16x96xf32, #tpu.memory_space<vmem>>, vector<16x16xf32>
    %67 = vector.shape_cast %66 : vector<16x16xf32> to vector<2x8x16xf32>
    %68 = vector.shape_cast %65 : vector<2x8x16xf32> to vector<1x2x8x16xf32>
    %69 = vector.shape_cast %67 : vector<2x8x16xf32> to vector<1x2x8x16xf32>
    %70 = tpu.concatenate %68, %69 in 0 : vector<1x2x8x16xf32>, vector<1x2x8x16xf32> -> vector<2x2x8x16xf32>
    %71 = vector.shape_cast %70 : vector<2x2x8x16xf32> to vector<4x8x16xf32>
    %72 = arith.truncf %71 : vector<4x8x16xf32> to vector<4x8x16xbf16>
    "tpu.trace_start"() <{level = 10 : i32, message = "gqd,gkd->gqk"}> : () -> ()
    %cst_31 = arith.constant dense<0.000000e+00> : vector<4x8x8xf32>
    %73 = tpu.matmul %54, %63, %cst_31 {dimension_numbers = #tpu.dot_dimension_numbers<[2], [2], [1], [1], [0, 0, 0, 1, 1, 1], [0], [0]>} : vector<4x8x16xbf16>, vector<4x8x16xbf16>, vector<4x8x8xf32> -> vector<4x8x8xf32>
    "tpu.trace_stop"() : () -> ()
    %74 = vector.broadcast %36 : vector<4x1x8xf32> to vector<4x8x8xf32>
    %75 = arith.addf %73, %74 : vector<4x8x8xf32>
    %cst_32 = arith.constant dense<0xFF800000> : vector<4x8xf32>
    %76 = vector.multi_reduction <maximumf>, %75, %cst_32 [2] : vector<4x8x8xf32> to vector<4x8xf32>
    %77 = vector.shape_cast %76 : vector<4x8xf32> to vector<4x8x1xf32>
    %78 = vector.broadcast %77 : vector<4x8x1xf32> to vector<4x8x8xf32>
    %79 = arith.subf %75, %78 : vector<4x8x8xf32>
    %80 = math.exp %79 : vector<4x8x8xf32>
    %cst_33 = arith.constant dense<0.000000e+00> : vector<4x8xf32>
    %81 = vector.multi_reduction <add>, %80, %cst_33 [2] : vector<4x8x8xf32> to vector<4x8xf32>
    %82 = vector.shape_cast %81 : vector<4x8xf32> to vector<4x8x1xf32>
    %83 = tpu.reciprocal %82 {approx = true} : vector<4x8x1xf32> -> vector<4x8x1xf32>
    %84 = vector.broadcast %83 : vector<4x8x1xf32> to vector<4x8x8xf32>
    %85 = arith.mulf %80, %84 : vector<4x8x8xf32>
    %86 = arith.truncf %85 : vector<4x8x8xf32> to vector<4x8x8xbf16>
    "tpu.trace_start"() <{level = 10 : i32, message = "gqk,gkd->gqd"}> : () -> ()
    %cst_34 = arith.constant dense<0.000000e+00> : vector<4x8x16xf32>
    %87 = tpu.matmul %86, %72, %cst_34 {dimension_numbers = #tpu.dot_dimension_numbers<[2], [1], [1], [2], [0, 0, 0, 1, 1, 2], [0], [0]>} : vector<4x8x8xbf16>, vector<4x8x16xbf16>, vector<4x8x16xf32> -> vector<4x8x16xf32>
    "tpu.trace_stop"() : () -> ()
    %88 = vector.shape_cast %87 : vector<4x8x16xf32> to vector<2x2x8x16xf32>
    %89 = vector.extract_strided_slice %88 {offsets = [0, 0, 0, 0], sizes = [1, 2, 8, 16], strides = [1, 1, 1, 1]} : vector<2x2x8x16xf32> to vector<1x2x8x16xf32>
    %90 = vector.shape_cast %89 : vector<1x2x8x16xf32> to vector<2x8x16xf32>
    %91 = vector.shape_cast %90 : vector<2x8x16xf32> to vector<16x16xf32>
    %c0_35 = arith.constant 0 : index
    %c0_36 = arith.constant 0 : index
    %92 = vector.load %arg15[%c0_35, %c0_36] : memref<16x32xf32, #tpu.memory_space<vmem>>, vector<16x16xf32>
    tpu.vector_store %arg15[%c0_35, %c0_36], %91 {strides = array<i32>} : memref<16x32xf32, #tpu.memory_space<vmem>>, vector<16x16xf32>,
    %93 = vector.extract_strided_slice %88 {offsets = [1, 0, 0, 0], sizes = [1, 2, 8, 16], strides = [1, 1, 1, 1]} : vector<2x2x8x16xf32> to vector<1x2x8x16xf32>
    %94 = vector.shape_cast %93 : vector<1x2x8x16xf32> to vector<2x8x16xf32>
    %95 = vector.shape_cast %94 : vector<2x8x16xf32> to vector<16x16xf32>
    %c0_37 = arith.constant 0 : index
    %c16_38 = arith.constant 16 : index
    %96 = vector.load %arg15[%c0_37, %c16_38] : memref<16x32xf32, #tpu.memory_space<vmem>>, vector<16x16xf32>
    tpu.vector_store %arg15[%c0_37, %c16_38], %95 {strides = array<i32>} : memref<16x32xf32, #tpu.memory_space<vmem>>, vector<16x16xf32>,
    %c0_39 = arith.constant 0 : index
    %c0_40 = arith.constant 0 : index
    %97 = vector.load %arg15[%c0_39, %c0_40] : memref<16x32xf32, #tpu.memory_space<vmem>>, vector<16x32xf32>
    %98 = arith.truncf %97 : vector<16x32xf32> to vector<16x32xbf16>
    %c0_41 = arith.constant 0 : index
    %c0_42 = arith.constant 0 : index
    %c0_43 = arith.constant 0 : index
    %99 = vector.load %arg6[%c0_41, %c0_42, %c0_43] : memref<2x32x32xbf16, #tpu.memory_space<vmem>>, vector<1x32x32xbf16>
    %100 = vector.shape_cast %99 : vector<1x32x32xbf16> to vector<32x32xbf16>
    %cst_44 = arith.constant dense<0.000000e+00> : vector<16x32xf32>
    %101 = tpu.matmul %98, %100, %cst_44 {dimension_numbers = #tpu.dot_dimension_numbers<[1], [0], [0], [1], [0, 0, 1, 1], [], []>} : vector<16x32xbf16>, vector<32x32xbf16>, vector<16x32xf32> -> vector<16x32xf32>
    %c0_45 = arith.constant 0 : index
    %c0_46 = arith.constant 0 : index
    %c0_47 = arith.constant 0 : index
    %102 = vector.load %arg7[%c0_45, %c0_46, %c0_47] : memref<2x1x32xf32, #tpu.memory_space<vmem>>, vector<1x1x32xf32>
    %103 = vector.shape_cast %102 : vector<1x1x32xf32> to vector<1x32xf32>
    %104 = vector.broadcast %103 : vector<1x32xf32> to vector<16x32xf32>
    %105 = arith.addf %101, %104 : vector<16x32xf32>
    %106 = arith.addf %105, %27 : vector<16x32xf32>
    %c0_48 = arith.constant 0 : index
    %c0_49 = arith.constant 0 : index
    %c0_50 = arith.constant 0 : index
    %107 = vector.load %arg8[%c0_48, %c0_49, %c0_50] : memref<2x4x32xf32, #tpu.memory_space<vmem>>, vector<1x1x32xf32>
    %108 = vector.shape_cast %107 : vector<1x1x32xf32> to vector<1x32xf32>
    %c0_51 = arith.constant 0 : index
    %c1_52 = arith.constant 1 : index
    %c0_53 = arith.constant 0 : index
    %109 = vector.load %arg8[%c0_51, %c1_52, %c0_53] : memref<2x4x32xf32, #tpu.memory_space<vmem>>, vector<1x1x32xf32>
    %110 = vector.shape_cast %109 : vector<1x1x32xf32> to vector<1x32xf32>
    %cst_54 = arith.constant dense<0.000000e+00> : vector<16xf32>
    %111 = vector.multi_reduction <add>, %106, %cst_54 [1] : vector<16x32xf32> to vector<16xf32>
    %112 = vector.shape_cast %111 : vector<16xf32> to vector<16x1xf32>
    %cst_55 = arith.constant 3.200000e+01 : f32
    %113 = vector.broadcast %cst_55 : f32 to vector<16x1xf32>
    %114 = arith.divf %112, %113 : vector<16x1xf32>
    %115 = arith.mulf %106, %106 : vector<16x32xf32>
    %cst_56 = arith.constant dense<0.000000e+00> : vector<16xf32>
    %116 = vector.multi_reduction <add>, %115, %cst_56 [1] : vector<16x32xf32> to vector<16xf32>
    %117 = vector.shape_cast %116 : vector<16xf32> to vector<16x1xf32>
    %cst_57 = arith.constant 3.200000e+01 : f32
    %118 = vector.broadcast %cst_57 : f32 to vector<16x1xf32>
    %119 = arith.divf %117, %118 : vector<16x1xf32>
    %120 = arith.mulf %114, %114 : vector<16x1xf32>
    %121 = arith.subf %119, %120 : vector<16x1xf32>
    %cst_58 = arith.constant 0.000000e+00 : f32
    %122 = vector.broadcast %cst_58 : f32 to vector<16x1xf32>
    %123 = arith.maximumf %121, %122 : vector<16x1xf32>
    %cst_59 = arith.constant 9.99999996E-13 : f32
    %124 = vector.broadcast %cst_59 : f32 to vector<16x1xf32>
    %125 = arith.addf %123, %124 : vector<16x1xf32>
    %126 = math.rsqrt %125 : vector<16x1xf32>
    %127 = vector.broadcast %126 : vector<16x1xf32> to vector<16x32xf32>
    %128 = vector.broadcast %108 : vector<1x32xf32> to vector<16x32xf32>
    %129 = arith.mulf %127, %128 : vector<16x32xf32>
    %130 = vector.broadcast %114 : vector<16x1xf32> to vector<16x32xf32>
    %131 = arith.subf %106, %130 : vector<16x32xf32>
    %132 = arith.mulf %131, %129 : vector<16x32xf32>
    %133 = vector.broadcast %110 : vector<1x32xf32> to vector<16x32xf32>
    %134 = arith.addf %132, %133 : vector<16x32xf32>
    %135 = arith.truncf %134 : vector<16x32xf32> to vector<16x32xbf16>
    %c0_60 = arith.constant 0 : index
    %c0_61 = arith.constant 0 : index
    %c0_62 = arith.constant 0 : index
    %136 = vector.load %arg9[%c0_60, %c0_61, %c0_62] : memref<2x32x64xbf16, #tpu.memory_space<vmem>>, vector<1x32x64xbf16>
    %137 = vector.shape_cast %136 : vector<1x32x64xbf16> to vector<32x64xbf16>
    %cst_63 = arith.constant dense<0.000000e+00> : vector<16x64xf32>
    %138 = tpu.matmul %135, %137, %cst_63 {dimension_numbers = #tpu.dot_dimension_numbers<[1], [0], [0], [1], [0, 0, 1, 1], [], []>} : vector<16x32xbf16>, vector<32x64xbf16>, vector<16x64xf32> -> vector<16x64xf32>
    %c0_64 = arith.constant 0 : index
    %c0_65 = arith.constant 0 : index
    %c0_66 = arith.constant 0 : index
    %139 = vector.load %arg10[%c0_64, %c0_65, %c0_66] : memref<2x1x64xf32, #tpu.memory_space<vmem>>, vector<1x1x64xf32>
    %140 = vector.shape_cast %139 : vector<1x1x64xf32> to vector<1x64xf32>
    %141 = vector.broadcast %140 : vector<1x64xf32> to vector<16x64xf32>
    %142 = arith.addf %138, %141 : vector<16x64xf32>
    %cst_67 = arith.constant 5.000000e-01 : f32
    %143 = vector.broadcast %cst_67 : f32 to vector<16x64xf32>
    %144 = arith.mulf %143, %142 : vector<16x64xf32>
    %cst_68 = arith.constant 4.471500e-02 : f32
    %145 = vector.broadcast %cst_68 : f32 to vector<16x64xf32>
    %146 = arith.mulf %145, %142 : vector<16x64xf32>
    %147 = arith.mulf %146, %142 : vector<16x64xf32>
    %148 = arith.mulf %147, %142 : vector<16x64xf32>
    %149 = arith.addf %142, %148 : vector<16x64xf32>
    %cst_69 = arith.constant 0.797884583 : f32
    %150 = vector.broadcast %cst_69 : f32 to vector<16x64xf32>
    %151 = arith.mulf %150, %149 : vector<16x64xf32>
    %152 = math.tanh %151 : vector<16x64xf32>
    %cst_70 = arith.constant 1.000000e+00 : f32
    %153 = vector.broadcast %cst_70 : f32 to vector<16x64xf32>
    %154 = arith.addf %153, %152 : vector<16x64xf32>
    %155 = arith.mulf %144, %154 : vector<16x64xf32>
    %156 = arith.truncf %155 : vector<16x64xf32> to vector<16x64xbf16>
    %c0_71 = arith.constant 0 : index
    %c0_72 = arith.constant 0 : index
    %c0_73 = arith.constant 0 : index
    %157 = vector.load %arg11[%c0_71, %c0_72, %c0_73] : memref<2x64x32xbf16, #tpu.memory_space<vmem>>, vector<1x64x32xbf16>
    %158 = vector.shape_cast %157 : vector<1x64x32xbf16> to vector<64x32xbf16>
    %cst_74 = arith.constant dense<0.000000e+00> : vector<16x32xf32>
    %159 = tpu.matmul %156, %158, %cst_74 {dimension_numbers = #tpu.dot_dimension_numbers<[1], [0], [0], [1], [0, 0, 1, 1], [], []>} : vector<16x64xbf16>, vector<64x32xbf16>, vector<16x32xf32> -> vector<16x32xf32>
    %c0_75 = arith.constant 0 : index
    %c0_76 = arith.constant 0 : index
    %c0_77 = arith.constant 0 : index
    %160 = vector.load %arg12[%c0_75, %c0_76, %c0_77] : memref<2x1x32xf32, #tpu.memory_space<vmem>>, vector<1x1x32xf32>
    %161 = vector.shape_cast %160 : vector<1x1x32xf32> to vector<1x32xf32>
    %162 = vector.broadcast %161 : vector<1x32xf32> to vector<16x32xf32>
    %163 = arith.addf %159, %162 : vector<16x32xf32>
    %164 = arith.addf %163, %134 : vector<16x32xf32>
    %c0_78 = arith.constant 0 : index
    %c2 = arith.constant 2 : index
    %c0_79 = arith.constant 0 : index
    %165 = vector.load %arg8[%c0_78, %c2, %c0_79] : memref<2x4x32xf32, #tpu.memory_space<vmem>>, vector<1x1x32xf32>
    %166 = vector.shape_cast %165 : vector<1x1x32xf32> to vector<1x32xf32>
    %c0_80 = arith.constant 0 : index
    %c3 = arith.constant 3 : index
    %c0_81 = arith.constant 0 : index
    %167 = vector.load %arg8[%c0_80, %c3, %c0_81] : memref<2x4x32xf32, #tpu.memory_space<vmem>>, vector<1x1x32xf32>
    %168 = vector.shape_cast %167 : vector<1x1x32xf32> to vector<1x32xf32>
    %cst_82 = arith.constant dense<0.000000e+00> : vector<16xf32>
    %169 = vector.multi_reduction <add>, %164, %cst_82 [1] : vector<16x32xf32> to vector<16xf32>
    %170 = vector.shape_cast %169 : vector<16xf32> to vector<16x1xf32>
    %cst_83 = arith.constant 3.200000e+01 : f32
    %171 = vector.broadcast %cst_83 : f32 to vector<16x1xf32>
    %172 = arith.divf %170, %171 : vector<16x1xf32>
    %173 = arith.mulf %164, %164 : vector<16x32xf32>
    %cst_84 = arith.constant dense<0.000000e+00> : vector<16xf32>
    %174 = vector.multi_reduction <add>, %173, %cst_84 [1] : vector<16x32xf32> to vector<16xf32>
    %175 = vector.shape_cast %174 : vector<16xf32> to vector<16x1xf32>
    %cst_85 = arith.constant 3.200000e+01 : f32
    %176 = vector.broadcast %cst_85 : f32 to vector<16x1xf32>
    %177 = arith.divf %175, %176 : vector<16x1xf32>
    %178 = arith.mulf %172, %172 : vector<16x1xf32>
    %179 = arith.subf %177, %178 : vector<16x1xf32>
    %cst_86 = arith.constant 0.000000e+00 : f32
    %180 = vector.broadcast %cst_86 : f32 to vector<16x1xf32>
    %181 = arith.maximumf %179, %180 : vector<16x1xf32>
    %cst_87 = arith.constant 9.99999996E-13 : f32
    %182 = vector.broadcast %cst_87 : f32 to vector<16x1xf32>
    %183 = arith.addf %181, %182 : vector<16x1xf32>
    %184 = math.rsqrt %183 : vector<16x1xf32>
    %185 = vector.broadcast %184 : vector<16x1xf32> to vector<16x32xf32>
    %186 = vector.broadcast %166 : vector<1x32xf32> to vector<16x32xf32>
    %187 = arith.mulf %185, %186 : vector<16x32xf32>
    %188 = vector.broadcast %172 : vector<16x1xf32> to vector<16x32xf32>
    %189 = arith.subf %164, %188 : vector<16x32xf32>
    %190 = arith.mulf %189, %187 : vector<16x32xf32>
    %191 = vector.broadcast %168 : vector<1x32xf32> to vector<16x32xf32>
    %192 = arith.addf %190, %191 : vector<16x32xf32>
    %193 = arith.truncf %192 : vector<16x32xf32> to vector<16x32xbf16>
    %c1_88 = arith.constant 1 : index
    %c0_89 = arith.constant 0 : index
    %c0_90 = arith.constant 0 : index
    %194 = vector.load %arg4[%c1_88, %c0_89, %c0_90] : memref<2x32x96xbf16, #tpu.memory_space<vmem>>, vector<1x32x96xbf16>
    %195 = vector.shape_cast %194 : vector<1x32x96xbf16> to vector<32x96xbf16>
    %cst_91 = arith.constant dense<0.000000e+00> : vector<16x96xf32>
    %196 = tpu.matmul %193, %195, %cst_91 {dimension_numbers = #tpu.dot_dimension_numbers<[1], [0], [0], [1], [0, 0, 1, 1], [], []>} : vector<16x32xbf16>, vector<32x96xbf16>, vector<16x96xf32> -> vector<16x96xf32>
    %c1_92 = arith.constant 1 : index
    %c0_93 = arith.constant 0 : index
    %c0_94 = arith.constant 0 : index
    %197 = vector.load %arg5[%c1_92, %c0_93, %c0_94] : memref<2x1x96xf32, #tpu.memory_space<vmem>>, vector<1x1x96xf32>
    %198 = vector.shape_cast %197 : vector<1x1x96xf32> to vector<1x96xf32>
    %199 = vector.broadcast %198 : vector<1x96xf32> to vector<16x96xf32>
    %200 = arith.addf %196, %199 : vector<16x96xf32>
    %c0_95 = arith.constant 0 : index
    %c0_96 = arith.constant 0 : index
    %201 = vector.load %arg14[%c0_95, %c0_96] : memref<16x96xf32, #tpu.memory_space<vmem>>, vector<16x96xf32>
    tpu.vector_store %arg14[%c0_95, %c0_96], %200 {strides = array<i32>} : memref<16x96xf32, #tpu.memory_space<vmem>>, vector<16x96xf32>,
    %c0_97 = arith.constant 0 : index
    %c0_98 = arith.constant 0 : index
    %202 = vector.load %arg14[%c0_97, %c0_98] : memref<16x96xf32, #tpu.memory_space<vmem>>, vector<16x16xf32>
    %203 = vector.shape_cast %202 : vector<16x16xf32> to vector<2x8x16xf32>
    %c0_99 = arith.constant 0 : index
    %c16_100 = arith.constant 16 : index
    %204 = vector.load %arg14[%c0_99, %c16_100] : memref<16x96xf32, #tpu.memory_space<vmem>>, vector<16x16xf32>
    %205 = vector.shape_cast %204 : vector<16x16xf32> to vector<2x8x16xf32>
    %206 = vector.shape_cast %203 : vector<2x8x16xf32> to vector<1x2x8x16xf32>
    %207 = vector.shape_cast %205 : vector<2x8x16xf32> to vector<1x2x8x16xf32>
    %208 = tpu.concatenate %206, %207 in 0 : vector<1x2x8x16xf32>, vector<1x2x8x16xf32> -> vector<2x2x8x16xf32>
    %209 = vector.shape_cast %208 : vector<2x2x8x16xf32> to vector<4x8x16xf32>
    %210 = arith.truncf %209 : vector<4x8x16xf32> to vector<4x8x16xbf16>
    %c0_101 = arith.constant 0 : index
    %c32_102 = arith.constant 32 : index
    %211 = vector.load %arg14[%c0_101, %c32_102] : memref<16x96xf32, #tpu.memory_space<vmem>>, vector<16x16xf32>
    %212 = vector.shape_cast %211 : vector<16x16xf32> to vector<2x8x16xf32>
    %c0_103 = arith.constant 0 : index
    %c48_104 = arith.constant 48 : index
    %213 = vector.load %arg14[%c0_103, %c48_104] : memref<16x96xf32, #tpu.memory_space<vmem>>, vector<16x16xf32>
    %214 = vector.shape_cast %213 : vector<16x16xf32> to vector<2x8x16xf32>
    %215 = vector.shape_cast %212 : vector<2x8x16xf32> to vector<1x2x8x16xf32>
    %216 = vector.shape_cast %214 : vector<2x8x16xf32> to vector<1x2x8x16xf32>
    %217 = tpu.concatenate %215, %216 in 0 : vector<1x2x8x16xf32>, vector<1x2x8x16xf32> -> vector<2x2x8x16xf32>
    %218 = vector.shape_cast %217 : vector<2x2x8x16xf32> to vector<4x8x16xf32>
    %219 = arith.truncf %218 : vector<4x8x16xf32> to vector<4x8x16xbf16>
    %c0_105 = arith.constant 0 : index
    %c64_106 = arith.constant 64 : index
    %220 = vector.load %arg14[%c0_105, %c64_106] : memref<16x96xf32, #tpu.memory_space<vmem>>, vector<16x16xf32>
    %221 = vector.shape_cast %220 : vector<16x16xf32> to vector<2x8x16xf32>
    %c0_107 = arith.constant 0 : index
    %c80_108 = arith.constant 80 : index
    %222 = vector.load %arg14[%c0_107, %c80_108] : memref<16x96xf32, #tpu.memory_space<vmem>>, vector<16x16xf32>
    %223 = vector.shape_cast %222 : vector<16x16xf32> to vector<2x8x16xf32>
    %224 = vector.shape_cast %221 : vector<2x8x16xf32> to vector<1x2x8x16xf32>
    %225 = vector.shape_cast %223 : vector<2x8x16xf32> to vector<1x2x8x16xf32>
    %226 = tpu.concatenate %224, %225 in 0 : vector<1x2x8x16xf32>, vector<1x2x8x16xf32> -> vector<2x2x8x16xf32>
    %227 = vector.shape_cast %226 : vector<2x2x8x16xf32> to vector<4x8x16xf32>
    %228 = arith.truncf %227 : vector<4x8x16xf32> to vector<4x8x16xbf16>
    "tpu.trace_start"() <{level = 10 : i32, message = "gqd,gkd->gqk"}> : () -> ()
    %cst_109 = arith.constant dense<0.000000e+00> : vector<4x8x8xf32>
    %229 = tpu.matmul %210, %219, %cst_109 {dimension_numbers = #tpu.dot_dimension_numbers<[2], [2], [1], [1], [0, 0, 0, 1, 1, 1], [0], [0]>} : vector<4x8x16xbf16>, vector<4x8x16xbf16>, vector<4x8x8xf32> -> vector<4x8x8xf32>
    "tpu.trace_stop"() : () -> ()
    %230 = vector.broadcast %36 : vector<4x1x8xf32> to vector<4x8x8xf32>
    %231 = arith.addf %229, %230 : vector<4x8x8xf32>
    %cst_110 = arith.constant dense<0xFF800000> : vector<4x8xf32>
    %232 = vector.multi_reduction <maximumf>, %231, %cst_110 [2] : vector<4x8x8xf32> to vector<4x8xf32>
    %233 = vector.shape_cast %232 : vector<4x8xf32> to vector<4x8x1xf32>
    %234 = vector.broadcast %233 : vector<4x8x1xf32> to vector<4x8x8xf32>
    %235 = arith.subf %231, %234 : vector<4x8x8xf32>
    %236 = math.exp %235 : vector<4x8x8xf32>
    %cst_111 = arith.constant dense<0.000000e+00> : vector<4x8xf32>
    %237 = vector.multi_reduction <add>, %236, %cst_111 [2] : vector<4x8x8xf32> to vector<4x8xf32>
    %238 = vector.shape_cast %237 : vector<4x8xf32> to vector<4x8x1xf32>
    %239 = tpu.reciprocal %238 {approx = true} : vector<4x8x1xf32> -> vector<4x8x1xf32>
    %240 = vector.broadcast %239 : vector<4x8x1xf32> to vector<4x8x8xf32>
    %241 = arith.mulf %236, %240 : vector<4x8x8xf32>
    %242 = arith.truncf %241 : vector<4x8x8xf32> to vector<4x8x8xbf16>
    "tpu.trace_start"() <{level = 10 : i32, message = "gqk,gkd->gqd"}> : () -> ()
    %cst_112 = arith.constant dense<0.000000e+00> : vector<4x8x16xf32>
    %243 = tpu.matmul %242, %228, %cst_112 {dimension_numbers = #tpu.dot_dimension_numbers<[2], [1], [1], [2], [0, 0, 0, 1, 1, 2], [0], [0]>} : vector<4x8x8xbf16>, vector<4x8x16xbf16>, vector<4x8x16xf32> -> vector<4x8x16xf32>
    "tpu.trace_stop"() : () -> ()
    %244 = vector.shape_cast %243 : vector<4x8x16xf32> to vector<2x2x8x16xf32>
    %245 = vector.extract_strided_slice %244 {offsets = [0, 0, 0, 0], sizes = [1, 2, 8, 16], strides = [1, 1, 1, 1]} : vector<2x2x8x16xf32> to vector<1x2x8x16xf32>
    %246 = vector.shape_cast %245 : vector<1x2x8x16xf32> to vector<2x8x16xf32>
    %247 = vector.shape_cast %246 : vector<2x8x16xf32> to vector<16x16xf32>
    %c0_113 = arith.constant 0 : index
    %c0_114 = arith.constant 0 : index
    %248 = vector.load %arg15[%c0_113, %c0_114] : memref<16x32xf32, #tpu.memory_space<vmem>>, vector<16x16xf32>
    tpu.vector_store %arg15[%c0_113, %c0_114], %247 {strides = array<i32>} : memref<16x32xf32, #tpu.memory_space<vmem>>, vector<16x16xf32>,
    %249 = vector.extract_strided_slice %244 {offsets = [1, 0, 0, 0], sizes = [1, 2, 8, 16], strides = [1, 1, 1, 1]} : vector<2x2x8x16xf32> to vector<1x2x8x16xf32>
    %250 = vector.shape_cast %249 : vector<1x2x8x16xf32> to vector<2x8x16xf32>
    %251 = vector.shape_cast %250 : vector<2x8x16xf32> to vector<16x16xf32>
    %c0_115 = arith.constant 0 : index
    %c16_116 = arith.constant 16 : index
    %252 = vector.load %arg15[%c0_115, %c16_116] : memref<16x32xf32, #tpu.memory_space<vmem>>, vector<16x16xf32>
    tpu.vector_store %arg15[%c0_115, %c16_116], %251 {strides = array<i32>} : memref<16x32xf32, #tpu.memory_space<vmem>>, vector<16x16xf32>,
    %c0_117 = arith.constant 0 : index
    %c0_118 = arith.constant 0 : index
    %253 = vector.load %arg15[%c0_117, %c0_118] : memref<16x32xf32, #tpu.memory_space<vmem>>, vector<16x32xf32>
    %254 = arith.truncf %253 : vector<16x32xf32> to vector<16x32xbf16>
    %c1_119 = arith.constant 1 : index
    %c0_120 = arith.constant 0 : index
    %c0_121 = arith.constant 0 : index
    %255 = vector.load %arg6[%c1_119, %c0_120, %c0_121] : memref<2x32x32xbf16, #tpu.memory_space<vmem>>, vector<1x32x32xbf16>
    %256 = vector.shape_cast %255 : vector<1x32x32xbf16> to vector<32x32xbf16>
    %cst_122 = arith.constant dense<0.000000e+00> : vector<16x32xf32>
    %257 = tpu.matmul %254, %256, %cst_122 {dimension_numbers = #tpu.dot_dimension_numbers<[1], [0], [0], [1], [0, 0, 1, 1], [], []>} : vector<16x32xbf16>, vector<32x32xbf16>, vector<16x32xf32> -> vector<16x32xf32>
    %c1_123 = arith.constant 1 : index
    %c0_124 = arith.constant 0 : index
    %c0_125 = arith.constant 0 : index
    %258 = vector.load %arg7[%c1_123, %c0_124, %c0_125] : memref<2x1x32xf32, #tpu.memory_space<vmem>>, vector<1x1x32xf32>
    %259 = vector.shape_cast %258 : vector<1x1x32xf32> to vector<1x32xf32>
    %260 = vector.broadcast %259 : vector<1x32xf32> to vector<16x32xf32>
    %261 = arith.addf %257, %260 : vector<16x32xf32>
    %262 = arith.addf %261, %192 : vector<16x32xf32>
    %c1_126 = arith.constant 1 : index
    %c0_127 = arith.constant 0 : index
    %c0_128 = arith.constant 0 : index
    %263 = vector.load %arg8[%c1_126, %c0_127, %c0_128] : memref<2x4x32xf32, #tpu.memory_space<vmem>>, vector<1x1x32xf32>
    %264 = vector.shape_cast %263 : vector<1x1x32xf32> to vector<1x32xf32>
    %c1_129 = arith.constant 1 : index
    %c1_130 = arith.constant 1 : index
    %c0_131 = arith.constant 0 : index
    %265 = vector.load %arg8[%c1_129, %c1_130, %c0_131] : memref<2x4x32xf32, #tpu.memory_space<vmem>>, vector<1x1x32xf32>
    %266 = vector.shape_cast %265 : vector<1x1x32xf32> to vector<1x32xf32>
    %cst_132 = arith.constant dense<0.000000e+00> : vector<16xf32>
    %267 = vector.multi_reduction <add>, %262, %cst_132 [1] : vector<16x32xf32> to vector<16xf32>
    %268 = vector.shape_cast %267 : vector<16xf32> to vector<16x1xf32>
    %cst_133 = arith.constant 3.200000e+01 : f32
    %269 = vector.broadcast %cst_133 : f32 to vector<16x1xf32>
    %270 = arith.divf %268, %269 : vector<16x1xf32>
    %271 = arith.mulf %262, %262 : vector<16x32xf32>
    %cst_134 = arith.constant dense<0.000000e+00> : vector<16xf32>
    %272 = vector.multi_reduction <add>, %271, %cst_134 [1] : vector<16x32xf32> to vector<16xf32>
    %273 = vector.shape_cast %272 : vector<16xf32> to vector<16x1xf32>
    %cst_135 = arith.constant 3.200000e+01 : f32
    %274 = vector.broadcast %cst_135 : f32 to vector<16x1xf32>
    %275 = arith.divf %273, %274 : vector<16x1xf32>
    %276 = arith.mulf %270, %270 : vector<16x1xf32>
    %277 = arith.subf %275, %276 : vector<16x1xf32>
    %cst_136 = arith.constant 0.000000e+00 : f32
    %278 = vector.broadcast %cst_136 : f32 to vector<16x1xf32>
    %279 = arith.maximumf %277, %278 : vector<16x1xf32>
    %cst_137 = arith.constant 9.99999996E-13 : f32
    %280 = vector.broadcast %cst_137 : f32 to vector<16x1xf32>
    %281 = arith.addf %279, %280 : vector<16x1xf32>
    %282 = math.rsqrt %281 : vector<16x1xf32>
    %283 = vector.broadcast %282 : vector<16x1xf32> to vector<16x32xf32>
    %284 = vector.broadcast %264 : vector<1x32xf32> to vector<16x32xf32>
    %285 = arith.mulf %283, %284 : vector<16x32xf32>
    %286 = vector.broadcast %270 : vector<16x1xf32> to vector<16x32xf32>
    %287 = arith.subf %262, %286 : vector<16x32xf32>
    %288 = arith.mulf %287, %285 : vector<16x32xf32>
    %289 = vector.broadcast %266 : vector<1x32xf32> to vector<16x32xf32>
    %290 = arith.addf %288, %289 : vector<16x32xf32>
    %291 = arith.truncf %290 : vector<16x32xf32> to vector<16x32xbf16>
    %c1_138 = arith.constant 1 : index
    %c0_139 = arith.constant 0 : index
    %c0_140 = arith.constant 0 : index
    %292 = vector.load %arg9[%c1_138, %c0_139, %c0_140] : memref<2x32x64xbf16, #tpu.memory_space<vmem>>, vector<1x32x64xbf16>
    %293 = vector.shape_cast %292 : vector<1x32x64xbf16> to vector<32x64xbf16>
    %cst_141 = arith.constant dense<0.000000e+00> : vector<16x64xf32>
    %294 = tpu.matmul %291, %293, %cst_141 {dimension_numbers = #tpu.dot_dimension_numbers<[1], [0], [0], [1], [0, 0, 1, 1], [], []>} : vector<16x32xbf16>, vector<32x64xbf16>, vector<16x64xf32> -> vector<16x64xf32>
    %c1_142 = arith.constant 1 : index
    %c0_143 = arith.constant 0 : index
    %c0_144 = arith.constant 0 : index
    %295 = vector.load %arg10[%c1_142, %c0_143, %c0_144] : memref<2x1x64xf32, #tpu.memory_space<vmem>>, vector<1x1x64xf32>
    %296 = vector.shape_cast %295 : vector<1x1x64xf32> to vector<1x64xf32>
    %297 = vector.broadcast %296 : vector<1x64xf32> to vector<16x64xf32>
    %298 = arith.addf %294, %297 : vector<16x64xf32>
    %cst_145 = arith.constant 5.000000e-01 : f32
    %299 = vector.broadcast %cst_145 : f32 to vector<16x64xf32>
    %300 = arith.mulf %299, %298 : vector<16x64xf32>
    %cst_146 = arith.constant 4.471500e-02 : f32
    %301 = vector.broadcast %cst_146 : f32 to vector<16x64xf32>
    %302 = arith.mulf %301, %298 : vector<16x64xf32>
    %303 = arith.mulf %302, %298 : vector<16x64xf32>
    %304 = arith.mulf %303, %298 : vector<16x64xf32>
    %305 = arith.addf %298, %304 : vector<16x64xf32>
    %cst_147 = arith.constant 0.797884583 : f32
    %306 = vector.broadcast %cst_147 : f32 to vector<16x64xf32>
    %307 = arith.mulf %306, %305 : vector<16x64xf32>
    %308 = math.tanh %307 : vector<16x64xf32>
    %cst_148 = arith.constant 1.000000e+00 : f32
    %309 = vector.broadcast %cst_148 : f32 to vector<16x64xf32>
    %310 = arith.addf %309, %308 : vector<16x64xf32>
    %311 = arith.mulf %300, %310 : vector<16x64xf32>
    %312 = arith.truncf %311 : vector<16x64xf32> to vector<16x64xbf16>
    %c1_149 = arith.constant 1 : index
    %c0_150 = arith.constant 0 : index
    %c0_151 = arith.constant 0 : index
    %313 = vector.load %arg11[%c1_149, %c0_150, %c0_151] : memref<2x64x32xbf16, #tpu.memory_space<vmem>>, vector<1x64x32xbf16>
    %314 = vector.shape_cast %313 : vector<1x64x32xbf16> to vector<64x32xbf16>
    %cst_152 = arith.constant dense<0.000000e+00> : vector<16x32xf32>
    %315 = tpu.matmul %312, %314, %cst_152 {dimension_numbers = #tpu.dot_dimension_numbers<[1], [0], [0], [1], [0, 0, 1, 1], [], []>} : vector<16x64xbf16>, vector<64x32xbf16>, vector<16x32xf32> -> vector<16x32xf32>
    %c1_153 = arith.constant 1 : index
    %c0_154 = arith.constant 0 : index
    %c0_155 = arith.constant 0 : index
    %316 = vector.load %arg12[%c1_153, %c0_154, %c0_155] : memref<2x1x32xf32, #tpu.memory_space<vmem>>, vector<1x1x32xf32>
    %317 = vector.shape_cast %316 : vector<1x1x32xf32> to vector<1x32xf32>
    %318 = vector.broadcast %317 : vector<1x32xf32> to vector<16x32xf32>
    %319 = arith.addf %315, %318 : vector<16x32xf32>
    %320 = arith.addf %319, %290 : vector<16x32xf32>
    %c1_156 = arith.constant 1 : index
    %c2_157 = arith.constant 2 : index
    %c0_158 = arith.constant 0 : index
    %321 = vector.load %arg8[%c1_156, %c2_157, %c0_158] : memref<2x4x32xf32, #tpu.memory_space<vmem>>, vector<1x1x32xf32>
    %322 = vector.shape_cast %321 : vector<1x1x32xf32> to vector<1x32xf32>
    %c1_159 = arith.constant 1 : index
    %c3_160 = arith.constant 3 : index
    %c0_161 = arith.constant 0 : index
    %323 = vector.load %arg8[%c1_159, %c3_160, %c0_161] : memref<2x4x32xf32, #tpu.memory_space<vmem>>, vector<1x1x32xf32>
    %324 = vector.shape_cast %323 : vector<1x1x32xf32> to vector<1x32xf32>
    %cst_162 = arith.constant dense<0.000000e+00> : vector<16xf32>
    %325 = vector.multi_reduction <add>, %320, %cst_162 [1] : vector<16x32xf32> to vector<16xf32>
    %326 = vector.shape_cast %325 : vector<16xf32> to vector<16x1xf32>
    %cst_163 = arith.constant 3.200000e+01 : f32
    %327 = vector.broadcast %cst_163 : f32 to vector<16x1xf32>
    %328 = arith.divf %326, %327 : vector<16x1xf32>
    %329 = arith.mulf %320, %320 : vector<16x32xf32>
    %cst_164 = arith.constant dense<0.000000e+00> : vector<16xf32>
    %330 = vector.multi_reduction <add>, %329, %cst_164 [1] : vector<16x32xf32> to vector<16xf32>
    %331 = vector.shape_cast %330 : vector<16xf32> to vector<16x1xf32>
    %cst_165 = arith.constant 3.200000e+01 : f32
    %332 = vector.broadcast %cst_165 : f32 to vector<16x1xf32>
    %333 = arith.divf %331, %332 : vector<16x1xf32>
    %334 = arith.mulf %328, %328 : vector<16x1xf32>
    %335 = arith.subf %333, %334 : vector<16x1xf32>
    %cst_166 = arith.constant 0.000000e+00 : f32
    %336 = vector.broadcast %cst_166 : f32 to vector<16x1xf32>
    %337 = arith.maximumf %335, %336 : vector<16x1xf32>
    %cst_167 = arith.constant 9.99999996E-13 : f32
    %338 = vector.broadcast %cst_167 : f32 to vector<16x1xf32>
    %339 = arith.addf %337, %338 : vector<16x1xf32>
    %340 = math.rsqrt %339 : vector<16x1xf32>
    %341 = vector.broadcast %340 : vector<16x1xf32> to vector<16x32xf32>
    %342 = vector.broadcast %322 : vector<1x32xf32> to vector<16x32xf32>
    %343 = arith.mulf %341, %342 : vector<16x32xf32>
    %344 = vector.broadcast %328 : vector<16x1xf32> to vector<16x32xf32>
    %345 = arith.subf %320, %344 : vector<16x32xf32>
    %346 = arith.mulf %345, %343 : vector<16x32xf32>
    %347 = vector.broadcast %324 : vector<1x32xf32> to vector<16x32xf32>
    %348 = arith.addf %346, %347 : vector<16x32xf32>
    %349 = vector.shape_cast %348 : vector<16x32xf32> to vector<2x8x32xf32>
    %c0_168 = arith.constant 0 : index
    %c0_169 = arith.constant 0 : index
    %c0_170 = arith.constant 0 : index
    %350 = vector.load %arg13[%c0_168, %c0_169, %c0_170] : memref<2x8x32xf32, #tpu.memory_space<vmem>>, vector<2x8x32xf32>
    tpu.vector_store %arg13[%c0_168, %c0_169, %c0_170], %349 {strides = array<i32>} : memref<2x8x32xf32, #tpu.memory_space<vmem>>, vector<2x8x32xf32>,
    return
  }
  func.func @transform_0(%arg0: i32) -> (i32, i32, i32) {
    %c0_i32 = arith.constant 0 : i32
    %c0_i32_0 = arith.constant 0 : i32
    %c0_i32_1 = arith.constant 0 : i32
    return %arg0, %c0_i32, %c0_i32_0 : i32, i32, i32
  }
  func.func @transform_1(%arg0: i32) -> (i32, i32, i32) {
    %c0_i32 = arith.constant 0 : i32
    %c0_i32_0 = arith.constant 0 : i32
    %c0_i32_1 = arith.constant 0 : i32
    return %arg0, %c0_i32, %c0_i32_0 : i32, i32, i32
  }
  func.func @transform_2(%arg0: i32) -> (i32, i32) {
    %c0_i32 = arith.constant 0 : i32
    %c0_i32_0 = arith.constant 0 : i32
    %c0_i32_1 = arith.constant 0 : i32
    return %c0_i32, %c0_i32_0 : i32, i32
  }
  func.func @transform_3(%arg0: i32) -> (i32, i32, i32) {
    %c0_i32 = arith.constant 0 : i32
    %c0_i32_0 = arith.constant 0 : i32
    %c0_i32_1 = arith.constant 0 : i32
    %c0_i32_2 = arith.constant 0 : i32
    return %c0_i32, %c0_i32_0, %c0_i32_1 : i32, i32, i32
  }
  func.func @transform_4(%arg0: i32) -> (i32, i32, i32) {
    %c0_i32 = arith.constant 0 : i32
    %c0_i32_0 = arith.constant 0 : i32
    %c0_i32_1 = arith.constant 0 : i32
    %c0_i32_2 = arith.constant 0 : i32
    return %c0_i32, %c0_i32_0, %c0_i32_1 : i32, i32, i32
  }
  func.func @transform_5(%arg0: i32) -> (i32, i32, i32) {
    %c0_i32 = arith.constant 0 : i32
    %c0_i32_0 = arith.constant 0 : i32
    %c0_i32_1 = arith.constant 0 : i32
    %c0_i32_2 = arith.constant 0 : i32
    return %c0_i32, %c0_i32_0, %c0_i32_1 : i32, i32, i32
  }
  func.func @transform_6(%arg0: i32) -> (i32, i32, i32) {
    %c0_i32 = arith.constant 0 : i32
    %c0_i32_0 = arith.constant 0 : i32
    %c0_i32_1 = arith.constant 0 : i32
    %c0_i32_2 = arith.constant 0 : i32
    return %c0_i32, %c0_i32_0, %c0_i32_1 : i32, i32, i32
  }
  func.func @transform_7(%arg0: i32) -> (i32, i32, i32) {
    %c0_i32 = arith.constant 0 : i32
    %c0_i32_0 = arith.constant 0 : i32
    %c0_i32_1 = arith.constant 0 : i32
    %c0_i32_2 = arith.constant 0 : i32
    return %c0_i32, %c0_i32_0, %c0_i32_1 : i32, i32, i32
  }
  func.func @transform_8(%arg0: i32) -> (i32, i32, i32) {
    %c0_i32 = arith.constant 0 : i32
    %c0_i32_0 = arith.constant 0 : i32
    %c0_i32_1 = arith.constant 0 : i32
    %c0_i32_2 = arith.constant 0 : i32
    return %c0_i32, %c0_i32_0, %c0_i32_1 : i32, i32, i32
  }
  func.func @transform_9(%arg0: i32) -> (i32, i32, i32) {
    %c0_i32 = arith.constant 0 : i32
    %c0_i32_0 = arith.constant 0 : i32
    %c0_i32_1 = arith.constant 0 : i32
    %c0_i32_2 = arith.constant 0 : i32
    return %c0_i32, %c0_i32_0, %c0_i32_1 : i32, i32, i32
  }
  func.func @transform_10(%arg0: i32) -> (i32, i32, i32) {
    %c0_i32 = arith.constant 0 : i32
    %c0_i32_0 = arith.constant 0 : i32
    %c0_i32_1 = arith.constant 0 : i32
    %c0_i32_2 = arith.constant 0 : i32
    return %c0_i32, %c0_i32_0, %c0_i32_1 : i32, i32, i32
  }
  func.func @transform_11(%arg0: i32) -> (i32, i32, i32) {
    %c0_i32 = arith.constant 0 : i32
    %c0_i32_0 = arith.constant 0 : i32
    %c0_i32_1 = arith.constant 0 : i32
    %c0_i32_2 = arith.constant 0 : i32
    return %c0_i32, %c0_i32_0, %c0_i32_1 : i32, i32, i32
  }
  func.func @transform_12(%arg0: i32) -> (i32, i32, i32) {
    %c0_i32 = arith.constant 0 : i32
    %c0_i32_0 = arith.constant 0 : i32
    %c0_i32_1 = arith.constant 0 : i32
    return %arg0, %c0_i32, %c0_i32_0 : i32, i32, i32
  }
}

</mosaic_0001>

<bundles_post_ra>
// kernel: bert_text_encoder_forward.1
= control target key start
LH: loop header
LB: loop body
LE: loop exit
PB: predicated region body
PF: predicated region fallthrough
CT: control target
= control target key end

     0   :  { %vm47_vm0 = vcmask 261120   ;;  %s2797_s0 = inlined_call_operand.vmem [shape: f32[2,8,32], index: 0, kind: input, shape index: {}]   ;;  %s2798_s1 = inlined_call_operand.vmem [shape: f32[2,1,8], index: 1, kind: input, shape index: {}]   ;;  %s2799_s2 = inlined_call_operand.vmem [shape: f32[2,32], index: 2, kind: input, shape index: {}]   ;;  %s2800_s3 = inlined_call_operand.vmem [shape: bf16[2,32,96], index: 3, kind: input, shape index: {}]   ;;  %s2801_s4 = inlined_call_operand.vmem [shape: f32[2,1,96], index: 4, kind: input, shape index: {}]   ;;  %s2802_s5 = inlined_call_operand.vmem [shape: bf16[2,32,32], index: 5, kind: input, shape index: {}]   ;;  %s2803_s6 = inlined_call_operand.vmem [shape: f32[2,1,32], index: 6, kind: input, shape index: {}]   ;;  %s2804_s7 = inlined_call_operand.vmem [shape: f32[2,4,32], index: 7, kind: input, shape index: {}]   ;;  %s2805_s8 = inlined_call_operand.vmem [shape: bf16[2,32,64], index: 8, kind: input, shape index: {}]   ;;  %s2806_s9 = inlined_call_operand.vmem [shape: f32[2,1,64], index: 9, kind: input, shape index: {}]   ;;  %s2807_s10 = inlined_call_operand.vmem [shape: bf16[2,64,32], index: 10, kind: input, shape index: {}]   ;;  %s2808_s11 = inlined_call_operand.vmem [shape: f32[2,1,32], index: 11, kind: input, shape index: {}]   ;;  %s2809_s12 = inlined_call_operand.hbm [shape: f32[2,8,32], index: 12, kind: output, shape index: {}]  }
   0x1   :  { %v43_v0 = vld [vmem:[%s2797_s0] sm:$0xff]  ;;  %v44_v1 = vld [vmem:[%s2797_s0 + $0x8] sm:$0xff] }
   0x2   :  { %v48_v2 = vsel %vm47_vm0, %v43_v0, 0.0  ;;  %v57_v3 = vmul.f32 %v43_v0, %v43_v0  ;;  %v51_v4 = vsel %vm47_vm0, %v44_v1, 0.0  ;;  %v58_v5 = vmul.f32 %v44_v1, %v44_v1 }
   0x3   :  { %49 = vadd.xlane.f32.xlu0 %v48_v2 }
   0x4   :  { %v59_v6 = vsel %vm47_vm0, %v57_v3, 0.0  ;;  %v62_v7 = vsel %vm47_vm0, %v58_v5, 0.0 }
   0x5   :  { %60 = vadd.xlane.f32.xlu1 %v59_v6 }
   0x7   :  { %52 = vadd.xlane.f32.xlu0 %v51_v4 }
   0x9   :  { %63 = vadd.xlane.f32.xlu1 %v62_v7 }
   0xa   :  { %17 = vsyncpa [#allocation5], 0  ;;  %v2217_v8 = vld [vmem:[%s2800_s3] sm:$0xff]   ;;  %v2321_v9 = vmov 0.0   ;;  %vm2322_vm1 = vmmov 0   ;;  %v2218_v10 = vld [vmem:[%s2800_s3 + $0x8] sm:$0xff]  }
   0xb   :  { %2030 = vmatprep.subr.bf16.mxu1 %v2321_v9  ;;  %2034 = vmatprep.mubr.msk.bf16.mxu1 %vm2322_vm1, %v2321_v9  ;;  %v1880_v27 = vld [vmem:[%s2799_s2] ss:$0 sm:$0xff]  ;;  %v1881_v35 = vld [vmem:[%s2799_s2 + $0x1] ss:$0 sm:$0xff]  ;;  %vm167_vm2 = vcmask 785408   ;;  %s2323_s2 = smov 96  }
   0xc   :  { %2031 = vmatpush3.bf16.msra.mxu1 %v2217_v8  ;;  %2044 = vmatprep.subr.bf16.mxu0 %v2321_v9  ;;  %v1882_v40 = vld [vmem:[%s2801_s4] ss:$0 sm:$0xff]  ;;  %s2324_s16 = smov 112   ;;  %vm199_vm3 = vcmask 130048   ;;  %v94_v5 = vld [vmem:[%s2798_s1 + $0x1] sm:$0x1] }
   0xd   :  { %2032 = vmatprep.subr.bf16.mxu1 %v2321_v9  ;;  %2046 = vmatprep.mubr.msk.bf16.mxu0 %vm2322_vm1, %v2321_v9  ;;  %v93_v2 = vld [vmem:[%s2798_s1] sm:$0x1]  ;;  %v96_v8 = vsub.f32 1.0, %v94_v5  ;;  %vm393_vm4 = vcmask 64512   ;;  %s2325_s1 = smov 64   ;;  %vm447_vm5 = vcmask 1043456  }
   0xe   :  { %v95_v3 = vsub.f32 1.0, %v93_v2  ;;  %s2326_s25 = smov 16   ;;  %vm645_vm6 = vcmask 261248   ;;  %vm892_vm7 = vcmask 523264  }
  0x10   :  { %2033 = vmatpush3.bf16.msra.mxu1 %v2218_v10  ;;  %v97_v6 = vmul.f32 -1e+09, %v95_v3 }
  0x11   :  { %2038 = vmatprep.subr.bf16.mxu1 %v2321_v9 }
  0x90   :  { %v50_v11 = vpop.xlane.xlu0 %49 }
  0x91   :  { %v55_v12 = vmul.f32 0.03125, %v50_v11  ;;  %v98_v11 = vmul.f32 -1e+09, %v96_v8 }
  0x92   :  { %v61_v13 = vpop.xlane.xlu1 %60 }
  0x93   :  { %v67_v14 = vmul.f32 %v55_v12, %v55_v12  ;;  %v65_v15 = vmul.f32 0.03125, %v61_v13  ;;  %v83_v30 = vsub.f32 %v43_v0, %v55_v12 }
  0x94   :  { %v53_v16 = vpop.xlane.xlu0 %52 }
  0x95   :  { %v69_v17 = vsub.f32 %v65_v15, %v67_v14  ;;  %v56_v18 = vmul.f32 0.03125, %v53_v16 }
  0x96   :  { %v64_v19 = vpop.xlane.xlu1 %63 }
  0x97   :  { %v71_v20 = vmax.f32 %v69_v17, 0.0  ;;  %v68_v21 = vmul.f32 %v56_v18, %v56_v18  ;;  %v66_v22 = vmul.f32 0.03125, %v64_v19  ;;  %v84_v32 = vsub.f32 %v44_v1, %v56_v18 }
  0x98   :  { %v186_v1 = vlaneseq }
  0x99   :  { %v73_v23 = vadd.f32 1e-12, %v71_v20  ;;  %v70_v24 = vsub.f32 %v66_v22, %v68_v21 }
  0x9a   :  { %v187_v4 = vshrl.u32 %v186_v1, 7 }
  0x9b   :  { %2237 = vrsqrt.f32 %v73_v23  ;;  %v72_v25 = vmax.f32 %v70_v24, 0.0 }
  0x9c   :  { %v188_v7 = vsub.s32 0, %v187_v4 }
  0x9d   :  { %v74_v26 = vadd.f32 1e-12, %v72_v25 }
  0x9e   :  { %v2486_v10 = vrot.slane %v97_v6, %v188_v7  ;;  %v2489_v15 = vrot.slane %v98_v11, %v188_v7 }
  0x9f   :  { %2239 = vrsqrt.f32 %v74_v26 }
  0xa5   :  { %v2238_v28 = vpop.eup %2237 }
  0xa6   :  { %v81_v29 = vmul.f32 %v2238_v28, %v1880_v27 }
  0xa8   :  { %v85_v34 = vmul.f32 %v83_v30, %v81_v29 }
  0xa9   :  { %v2240_v31 = vpop.eup %2239 }
  0xaa   :  { %v82_v33 = vmul.f32 %v2240_v31, %v1880_v27  ;;  %v2425_v37 = vadd.f32 %v1881_v35, %v85_v34 }
  0xac   :  { %v86_v36 = vmul.f32 %v84_v32, %v82_v33 }
  0xae   :  { %v2427_v38 = vadd.f32 %v1881_v35, %v86_v36 }
  0xb0   :  { %v99_v39 = vpack.c.bf16 %v2427_v38, %v2425_v37 }
  0xb2   :  { %2035 = vmatmul.mubr.msk.bf16.vlgmr.msra.gmra.mrb[0].mxu1 %vm47_vm0, %v99_v39 }
  0xb3   :  { %2040 = vmatprep.mubr.msk.bf16.mxu1 %vm2322_vm1, %v2321_v9 }
 0x185   :  { %v160_v41 = vpop.f32.mrb[0].mxu1 }
 0x186   :  { %v161_v42 = vadd.f32 %v1882_v40, %v160_v41  ;;  %v2036_v43 = vpop.f32.mrb[1].mxu1 }
 0x187   :  { %v163_v44 = vpop.f32.mrb[2].mxu1 }
 0x188   :  { %168 = vst.msk [vmem:[#allocation2] sm:$0xff] %vm167_vm2, %v161_v42  ;;  %v164_v45 = vadd.f32 %v1882_v40, %v163_v44  ;;  %v2037_v46 = vpop.f32.mrb[3].mxu1 }
 0x18a   :  { %169 = vst.msk [vmem:[#allocation2 + $0x8] sm:$0xff] %vm167_vm2, %v164_v45 }
 0x18f   :  { %v170_v47 = vld [vmem:[#allocation2] sm:$0xff] }
 0x190   :  { %v2439_v48 = vpack.c.bf16 %v170_v47, %v170_v47 }
 0x191   :  { %v171_v49 = vld [vmem:[#allocation2 + $0x8] sm:$0xff] }
 0x192   :  { %197 = vrot.lane.b32.xlu1 %v2439_v48, %s2323_s2  ;;  %v2207_v50 = vpack.i.bf16 %v171_v49, %v170_v47  ;;  %v2444_v51 = vpack.c.bf16 %v171_v49, %v171_v49 }
 0x194   :  { %2208 = vrot.lane.b32.xlu0 %v2207_v50, %s2324_s16 }
 0x196   :  { %247 = vrot.lane.b32.xlu1 %v2444_v51, %s2323_s2 }
 0x204   :  { %v198_v52 = vpop.permute.xlu1 %197 }
 0x205   :  { %v204_v53 = vsel %vm199_vm3, %v198_v52, 0 }
 0x206   :  { %2039 = vmatpush3.bf16.xpose.msra.mxu1 %v204_v53  ;;  %v2209_v54 = vpop.permute.xlu0 %2208 }
 0x207   :  { %v2211_v55 = vunpack.i.h.bf16 %v2209_v54  ;;  %v2210_v56 = vunpack.i.l.bf16 %v2209_v54  ;;  %2050 = vmatprep.subr.bf16.mxu1 %v2321_v9 }
 0x208   :  { %v248_v57 = vpop.permute.xlu1 %247 }
 0x209   :  { %v2450_v58 = vpack.c.bf16 %v2211_v55, %v2211_v55  ;;  %v2452_v59 = vpack.c.bf16 %v2210_v56, %v2210_v56  ;;  %v253_v60 = vsel %vm199_vm3, %v248_v57, 0 }
 0x20a   :  { %2045 = vmatpush3.bf16.xpose.msra.mxu0 %v253_v60 }
 0x20b   :  { %345 = vrot.lane.b32.xlu0 %v2450_v58, %s2323_s2  ;;  %296 = vrot.lane.b32.xlu1 %v2452_v59, %s2323_s2 }
 0x20c   :  { %2056 = vmatprep.subr.bf16.mxu0 %v2321_v9 }
 0x20d   :  { %2041 = vmatmul.mubr.msk.bf16.vlgmr.msra.gmra.mrb[4].mxu1 %vm199_vm3, %v2439_v48 }
 0x20e   :  { %2052 = vmatprep.mubr.msk.bf16.mxu1 %vm2322_vm1, %v2321_v9 }
 0x211   :  { %2047 = vmatmul.mubr.msk.bf16.vlgmr.msra.gmra.mrb[0].mxu0 %vm199_vm3, %v2444_v51 }
 0x212   :  { %2058 = vmatprep.mubr.msk.bf16.mxu0 %vm2322_vm1, %v2321_v9 }
 0x27d   :  { %v346_v61 = vpop.permute.xlu0 %345  ;;  %v297_v62 = vpop.permute.xlu1 %296 }
 0x27e   :  { %v351_v63 = vsel %vm199_vm3, %v346_v61, 0  ;;  %v302_v0 = vsel %vm199_vm3, %v297_v62, 0 }
 0x27f   :  { %2051 = vmatpush3.bf16.xpose.msra.mxu1 %v302_v0  ;;  %2057 = vmatpush3.bf16.xpose.msra.mxu0 %v351_v63 }
 0x280   :  { %2062 = vmatprep.subr.bf16.mxu1 %v2321_v9  ;;  %2068 = vmatprep.subr.bf16.mxu0 %v2321_v9 }
 0x286   :  { %2053 = vmatmul.mubr.msk.bf16.vlgmr.msra.gmra.mrb[8].mxu1 %vm199_vm3, %v2452_v59  ;;  %2059 = vmatmul.mubr.msk.bf16.vlgmr.msra.gmra.mrb[4].mxu0 %vm199_vm3, %v2450_v58 }
 0x287   :  { %2064 = vmatprep.mubr.msk.bf16.mxu1 %vm2322_vm1, %v2321_v9  ;;  %2070 = vmatprep.mubr.msk.bf16.mxu0 %vm2322_vm1, %v2321_v9 }
 0x2e0   :  { %v240_v12 = vpop.f32.mrb[4].mxu1 }
 0x2e1   :  { %v241_v13 = vadd.f32 %v240_v12, %v2486_v10  ;;  %v2042_v14 = vpop.f32.mrb[5].mxu1 }
 0x2e2   :  { %v243_v16 = vpop.f32.mrb[6].mxu1 }
 0x2e3   :  { %v2043_v17 = vpop.f32.mrb[7].mxu1  ;;  %v394_v18 = vsel %vm393_vm4, %v241_v13, -inf }
 0x2e4   :  { %v289_v19 = vpop.f32.mrb[0].mxu0  ;;  %395 = vmax.xlane.f32.xlu1 %v394_v18 }
 0x2e5   :  { %v290_v20 = vadd.f32 %v289_v19, %v2489_v15  ;;  %v2048_v21 = vpop.f32.mrb[1].mxu0 }
 0x2e6   :  { %v292_v22 = vpop.f32.mrb[2].mxu0 }
 0x2e7   :  { %v2049_v23 = vpop.f32.mrb[3].mxu0  ;;  %v397_v24 = vsel %vm393_vm4, %v290_v20, -inf }
 0x2e8   :  { %398 = vmax.xlane.f32.xlu0 %v397_v24 }
 0x2f5   :  { %442 = vrot.lane.b32.xlu1 %v2439_v48, %s2325_s1 }
 0x359   :  { %v338_v25 = vpop.f32.mrb[8].mxu1  ;;  %v387_v26 = vpop.f32.mrb[4].mxu0 }
 0x35a   :  { %v339_v27 = vadd.f32 %v338_v25, %v2486_v10  ;;  %v2054_v28 = vpop.f32.mrb[9].mxu1  ;;  %v2060_v29 = vpop.f32.mrb[5].mxu0  ;;  %v388_v32 = vadd.f32 %v387_v26, %v2489_v15  ;;  %v2219_v26 = vld [vmem:[%s2802_s5] sm:$0xff]  }
 0x35b   :  { %v341_v30 = vpop.f32.mrb[10].mxu1  ;;  %v390_v31 = vpop.f32.mrb[6].mxu0 }
 0x35c   :  { %v2055_v33 = vpop.f32.mrb[11].mxu1  ;;  %v2061_v34 = vpop.f32.mrb[7].mxu0  ;;  %v400_v35 = vsel %vm393_vm4, %v339_v27, -inf  ;;  %v403_v36 = vsel %vm393_vm4, %v388_v32, -inf }
 0x35d   :  { %401 = vmax.xlane.f32.xlu0 %v400_v35 }
 0x361   :  { %404 = vmax.xlane.f32.xlu0 %v403_v36 }
 0x371   :  { %v396_v39 = vpop.xlane.xlu1 %395 }
 0x372   :  { %v406_v40 = vsub.f32 %v241_v13, %v396_v39 }
 0x374   :  { %v410_v41 = vmul.f32 1.442695, %v406_v40 }
 0x375   :  { %v399_v42 = vpop.xlane.xlu0 %398  ;;  %v443_v43 = vpop.permute.xlu1 %442 }
 0x376   :  { %2241 = vpow2.f32 %v410_v41  ;;  %v407_v44 = vsub.f32 %v290_v20, %v399_v42  ;;  %v449_v45 = vsel %vm447_vm5, %v443_v43, 0 }
 0x377   :  { %2063 = vmatpush3.bf16.msra.mxu1 %v449_v45 }
 0x378   :  { %v412_v46 = vmul.f32 1.442695, %v407_v44  ;;  %2074 = vmatprep.subr.bf16.mxu1 %v2321_v9 }
 0x37a   :  { %2243 = vpow2.f32 %v412_v46 }
 0x380   :  { %v2242_v47 = vpop.eup %2241 }
 0x381   :  { %v418_v48 = vsel %vm393_vm4, %v2242_v47, 0.0 }
 0x382   :  { %419 = vadd.xlane.f32.xlu1 %v418_v48 }
 0x384   :  { %v2244_v49 = vpop.eup %2243 }
 0x385   :  { %v421_v50 = vsel %vm393_vm4, %v2244_v49, 0.0 }
 0x386   :  { %422 = vadd.xlane.f32.xlu0 %v421_v50 }
 0x3ea   :  { %v402_v52 = vpop.xlane.xlu0 %401 }
 0x3eb   :  { %v408_v53 = vsub.f32 %v339_v27, %v402_v52  ;;  %v2220_v27 = vld [vmem:[%s2802_s5 + $0x8] sm:$0xff]  }
 0x3ed   :  { %v414_v54 = vmul.f32 1.442695, %v408_v53 }
 0x3ee   :  { %v405_v55 = vpop.xlane.xlu0 %404 }
 0x3ef   :  { %2245 = vpow2.f32 %v414_v54  ;;  %v409_v56 = vsub.f32 %v388_v32, %v405_v55 }
 0x3f1   :  { %v416_v57 = vmul.f32 1.442695, %v409_v56 }
 0x3f3   :  { %2247 = vpow2.f32 %v416_v57 }
 0x3f9   :  { %v2246_v60 = vpop.eup %2245 }
 0x3fa   :  { %v424_v61 = vsel %vm393_vm4, %v2246_v60, 0.0 }
 0x3fb   :  { %425 = vadd.xlane.f32.xlu1 %v424_v61 }
 0x3fd   :  { %v2248_v62 = vpop.eup %2247 }
 0x3fe   :  { %v427_v63 = vsel %vm393_vm4, %v2248_v62, 0.0 }
 0x3ff   :  { %428 = vadd.xlane.f32.xlu0 %v427_v63 }
 0x40c   :  { %539 = vrot.lane.b32.xlu1 %v2452_v59, %s2325_s1 }
 0x40f   :  { %v420_v0 = vpop.xlane.xlu1 %419 }
 0x410   :  { %2249 = vrcp.f32 %v420_v0  ;;  %587 = vrot.lane.b32.xlu1 %v2450_v58, %s2325_s1 }
 0x413   :  { %v423_v4 = vpop.xlane.xlu0 %422 }
 0x414   :  { %2251 = vrcp.f32 %v423_v4 }
 0x415   :  { %491 = vrot.lane.b32.xlu0 %v2444_v51, %s2325_s1 }
 0x41a   :  { %v2250_v1 = vpop.eup %2249 }
 0x41b   :  { %v434_v2 = vmul.f32 %v2250_v1, %v2242_v47  ;;  %v1894_v47 = vld [vmem:[%s2803_s6] ss:$0 sm:$0xff] }
 0x41d   :  { %v438_v3 = vpack.c.bf16 %v434_v2, %v434_v2 }
 0x41e   :  { %v2252_v59 = vpop.eup %2251 }
 0x41f   :  { %2065 = vmatmul.mubr.msk.bf16.vlgmr.msra.gmra.mrb[12].mxu1 %vm393_vm4, %v438_v3  ;;  %v435_v51 = vmul.f32 %v2252_v59, %v2244_v49 }
 0x420   :  { %2076 = vmatprep.mubr.msk.bf16.mxu1 %vm2322_vm1, %v2321_v9 }
 0x421   :  { %v439_v14 = vpack.c.bf16 %v435_v51, %v435_v51 }
 0x488   :  { %v426_v5 = vpop.xlane.xlu1 %425 }
 0x489   :  { %2253 = vrcp.f32 %v426_v5 }
 0x48c   :  { %v540_v6 = vpop.permute.xlu1 %539  ;;  %v429_v7 = vpop.xlane.xlu0 %428 }
 0x48d   :  { %v545_v58 = vsel %vm447_vm5, %v540_v6, 0  ;;  %2255 = vrcp.f32 %v429_v7 }
 0x48e   :  { %2075 = vmatpush3.bf16.msra.mxu1 %v545_v58 }
 0x48f   :  { %2086 = vmatprep.subr.bf16.mxu1 %v2321_v9 }
 0x490   :  { %v492_v8 = vpop.permute.xlu0 %491  ;;  %v588_v12 = vpop.permute.xlu1 %587 }
 0x491   :  { %v497_v11 = vsel %vm447_vm5, %v492_v8, 0  ;;  %v593_v17 = vsel %vm447_vm5, %v588_v12, 0 }
 0x492   :  { %2069 = vmatpush3.bf16.msra.mxu0 %v497_v11 }
 0x493   :  { %v2254_v13 = vpop.eup %2253  ;;  %2080 = vmatprep.subr.bf16.mxu0 %v2321_v9 }
 0x494   :  { %v436_v16 = vmul.f32 %v2254_v13, %v2246_v60 }
 0x495   :  { %2071 = vmatmul.mubr.msk.bf16.vlgmr.msra.gmra.mrb[8].mxu0 %vm393_vm4, %v439_v14 }
 0x496   :  { %2081 = vmatpush3.bf16.msra.mxu0 %v593_v17  ;;  %v440_v18 = vpack.c.bf16 %v436_v16, %v436_v16  ;;  %2082 = vmatprep.mubr.msk.bf16.mxu0 %vm2322_vm1, %v2321_v9  ;;  %v1898_v17 = vld [vmem:[%s2804_s7] ss:$0 sm:$0xff] }
 0x497   :  { %v2256_v19 = vpop.eup %2255  ;;  %2094 = vmatprep.subr.bf16.mxu0 %v2321_v9 }
 0x498   :  { %v437_v20 = vmul.f32 %v2256_v19, %v2248_v62  ;;  %2077 = vmatmul.mubr.msk.bf16.vlgmr.msra.gmra.mrb[16].mxu1 %vm393_vm4, %v440_v18 }
 0x499   :  { %2090 = vmatprep.mubr.msk.bf16.mxu1 %vm2322_vm1, %v2321_v9  ;;  %2087 = vmatpush3.bf16.msra.mxu1 %v2219_v26 }
 0x49a   :  { %v441_v21 = vpack.c.bf16 %v437_v20, %v437_v20  ;;  %2088 = vmatprep.subr.bf16.mxu1 %v2321_v9 }
 0x49d   :  { %2083 = vmatmul.mubr.msk.bf16.vlgmr.msra.gmra.mrb[12].mxu0 %vm393_vm4, %v441_v21  ;;  %2089 = vmatpush3.bf16.msra.mxu1 %v2220_v27 }
 0x49e   :  { %2098 = vmatprep.mubr.msk.bf16.mxu0 %vm2322_vm1, %v2321_v9  ;;  %2102 = vmatprep.subr.bf16.mxu1 %v2321_v9 }
 0x4f2   :  { %v485_v22 = vpop.f32.mrb[12].mxu1 }
 0x4f3   :  { %635 = vst.msk [vmem:[#allocation3] sm:$0xff] %vm199_vm3, %v485_v22  ;;  %v2066_v23 = vpop.f32.mrb[13].mxu1 }
 0x4f4   :  { %v488_v24 = vpop.f32.mrb[14].mxu1 }
 0x4f5   :  { %v2067_v25 = vpop.f32.mrb[15].mxu1 }
 0x4f6   :  { %v1899_v25 = vld [vmem:[%s2804_s7 + $0x1] ss:$0 sm:$0xff] }
 0x568   :  { %v533_v28 = vpop.f32.mrb[8].mxu0 }
 0x569   :  { %636 = vst.msk [vmem:[#allocation3 + $0x8] sm:$0xff] %vm199_vm3, %v533_v28  ;;  %v2072_v29 = vpop.f32.mrb[9].mxu0 }
 0x56a   :  { %v536_v30 = vpop.f32.mrb[10].mxu0 }
 0x56b   :  { %v2073_v31 = vpop.f32.mrb[11].mxu0  ;;  %v581_v32 = vpop.f32.mrb[16].mxu1  ;;  %v2223_v30 = vld [vmem:[%s2807_s10] sm:$0xff]  }
 0x56c   :  { %639 = vrot.lane.b32.xlu1 %v581_v32, %s2326_s25  ;;  %v2078_v33 = vpop.f32.mrb[17].mxu1  ;;  %v2224_v31 = vld [vmem:[%s2807_s10 + $0x8] sm:$0xff]   ;;  %v2225_v32 = vld [vmem:[%s2807_s10 + $0x10] sm:$0xff]  }
 0x56d   :  { %v584_v34 = vpop.f32.mrb[18].mxu1  ;;  %v2226_v33 = vld [vmem:[%s2807_s10 + $0x18] sm:$0xff]  }
 0x56e   :  { %v2079_v35 = vpop.f32.mrb[19].mxu1  ;;  %v1900_v34 = vld [vmem:[%s2806_s9] ss:$0 sm:$0xff] }
 0x570   :  { %v629_v36 = vpop.f32.mrb[12].mxu0 }
 0x571   :  { %641 = vrot.lane.b32.xlu0 %v629_v36, %s2326_s25  ;;  %v2084_v39 = vpop.f32.mrb[13].mxu0 }
 0x572   :  { %v632_v40 = vpop.f32.mrb[14].mxu0 }
 0x573   :  { %v2085_v41 = vpop.f32.mrb[15].mxu0 }
 0x5de   :  { %v640_v42 = vpop.permute.xlu1 %639 }
 0x5df   :  { %646 = vst.msk [vmem:[#allocation3] sm:$0xff] %vm645_vm6, %v640_v42 }
 0x5e3   :  { %v642_v43 = vpop.permute.xlu0 %641 }
 0x5e4   :  { %647 = vst.msk [vmem:[#allocation3 + $0x8] sm:$0xff] %vm645_vm6, %v642_v43 }
 0x5e6   :  { %v648_v44 = vld [vmem:[#allocation3] sm:$0xff] }
 0x5eb   :  { %v649_v45 = vld [vmem:[#allocation3 + $0x8] sm:$0xff] }
 0x5ec   :  { %v650_v46 = vpack.c.bf16 %v649_v45, %v648_v44 }
 0x5ee   :  { %2091 = vmatmul.mubr.msk.bf16.vlgmr.msra.gmra.mrb[20].mxu1 %vm47_vm0, %v650_v46 }
 0x5ef   :  { %2110 = vmatprep.mubr.msk.bf16.mxu1 %vm2322_vm1, %v2321_v9  ;;  %2103 = vmatpush3.bf16.msra.mxu1 %v2223_v30 }
 0x5f0   :  { %2104 = vmatprep.subr.bf16.mxu1 %v2321_v9 }
 0x5f3   :  { %2105 = vmatpush3.bf16.msra.mxu1 %v2224_v31 }
 0x5f4   :  { %2106 = vmatprep.subr.bf16.mxu1 %v2321_v9 }
 0x5f7   :  { %2107 = vmatpush3.bf16.msra.mxu1 %v2225_v32  ;;  %v1910_v32 = vld [vmem:[%s2804_s7 + $0x2] ss:$0 sm:$0xff] }
 0x5f8   :  { %2108 = vmatprep.subr.bf16.mxu1 %v2321_v9 }
 0x5fb   :  { %2109 = vmatpush3.bf16.msra.mxu1 %v2226_v33 }
 0x5fc   :  { %2128 = vmatprep.subr.bf16.mxu1 %v2321_v9 }
 0x6c1   :  { %v711_v48 = vpop.f32.mrb[20].mxu1 }
 0x6c2   :  { %v712_v49 = vadd.f32 %v1894_v47, %v711_v48  ;;  %v2092_v50 = vpop.f32.mrb[21].mxu1 }
 0x6c3   :  { %v714_v52 = vpop.f32.mrb[22].mxu1 }
 0x6c4   :  { %v718_v53 = vadd.f32 %v712_v49, %v2425_v37  ;;  %v715_v54 = vadd.f32 %v1894_v47, %v714_v52  ;;  %v2093_v55 = vpop.f32.mrb[23].mxu1  ;;  %v2221_v37 = vld [vmem:[%s2805_s8] sm:$0xff]  }
 0x6c5   :  { %2095 = vmatpush3.bf16.msra.mxu0 %v2221_v37  ;;  %v1904_v37 = vld [vmem:[%s2808_s11] ss:$0 sm:$0xff] }
 0x6c6   :  { %v719_v56 = vadd.f32 %v715_v54, %v2427_v38  ;;  %v722_v57 = vsel %vm47_vm0, %v718_v53, 0.0  ;;  %v730_v61 = vmul.f32 %v718_v53, %v718_v53  ;;  %v2222_v38 = vld [vmem:[%s2805_s8 + $0x8] sm:$0xff]   ;;  %2096 = vmatprep.subr.bf16.mxu0 %v2321_v9 }
 0x6c7   :  { %723 = vadd.xlane.f32.xlu1 %v722_v57 }
 0x6c8   :  { %v725_v60 = vsel %vm47_vm0, %v719_v56, 0.0  ;;  %v732_v62 = vsel %vm47_vm0, %v730_v61, 0.0  ;;  %v731_v63 = vmul.f32 %v719_v56, %v719_v56 }
 0x6c9   :  { %726 = vadd.xlane.f32.xlu0 %v725_v60  ;;  %2097 = vmatpush3.bf16.msra.mxu0 %v2222_v38 }
 0x6ca   :  { %v735_v0 = vsel %vm47_vm0, %v731_v63, 0.0  ;;  %2114 = vmatprep.subr.bf16.mxu0 %v2321_v9 }
 0x6cd   :  { %733 = vadd.xlane.f32.xlu0 %v732_v62 }
 0x6d1   :  { %736 = vadd.xlane.f32.xlu0 %v735_v0 }
 0x754   :  { %v724_v1 = vpop.xlane.xlu1 %723 }
 0x755   :  { %v728_v3 = vmul.f32 0.03125, %v724_v1 }
 0x756   :  { %v727_v2 = vpop.xlane.xlu0 %726 }
 0x757   :  { %v740_v5 = vmul.f32 %v728_v3, %v728_v3  ;;  %v729_v59 = vmul.f32 0.03125, %v727_v2  ;;  %v756_v20 = vsub.f32 %v718_v53, %v728_v3 }
 0x759   :  { %v741_v51 = vmul.f32 %v729_v59, %v729_v59  ;;  %v757_v22 = vsub.f32 %v719_v56, %v729_v59 }
 0x75a   :  { %v734_v4 = vpop.xlane.xlu0 %733 }
 0x75b   :  { %v738_v6 = vmul.f32 0.03125, %v734_v4 }
 0x75d   :  { %v742_v7 = vsub.f32 %v738_v6, %v740_v5 }
 0x75e   :  { %v737_v58 = vpop.xlane.xlu0 %736 }
 0x75f   :  { %v744_v8 = vmax.f32 %v742_v7, 0.0  ;;  %v739_v11 = vmul.f32 0.03125, %v737_v58 }
 0x761   :  { %v746_v12 = vadd.f32 1e-12, %v744_v8  ;;  %v743_v13 = vsub.f32 %v739_v11, %v741_v51 }
 0x763   :  { %2257 = vrsqrt.f32 %v746_v12  ;;  %v745_v14 = vmax.f32 %v743_v13, 0.0  ;;  %v2227_v13 = vld [vmem:[%s2800_s3 + $0x10] sm:$0xff]  }
 0x765   :  { %v747_v16 = vadd.f32 1e-12, %v745_v14  ;;  %v2228_v14 = vld [vmem:[%s2800_s3 + $0x18] sm:$0xff]  }
 0x767   :  { %2259 = vrsqrt.f32 %v747_v16 }
 0x76d   :  { %v2258_v18 = vpop.eup %2257 }
 0x76e   :  { %v754_v19 = vmul.f32 %v2258_v18, %v1898_v17 }
 0x770   :  { %v758_v24 = vmul.f32 %v756_v20, %v754_v19 }
 0x771   :  { %v2260_v21 = vpop.eup %2259 }
 0x772   :  { %v755_v23 = vmul.f32 %v2260_v21, %v1898_v17  ;;  %v764_v27 = vadd.f32 %v1899_v25, %v758_v24 }
 0x774   :  { %v759_v26 = vmul.f32 %v757_v22, %v755_v23 }
 0x776   :  { %v765_v28 = vadd.f32 %v1899_v25, %v759_v26 }
 0x778   :  { %v766_v29 = vpack.c.bf16 %v765_v28, %v764_v27 }
 0x77a   :  { %2099 = vmatmul.mubr.msk.bf16.vlgmr.msra.gmra.mrb[16].mxu0 %vm47_vm0, %v766_v29 }
 0x77b   :  { %2118 = vmatprep.mubr.msk.bf16.mxu0 %vm2322_vm1, %v2321_v9  ;;  %2115 = vmatpush3.bf16.msra.mxu0 %v2227_v13 }
 0x77c   :  { %2116 = vmatprep.subr.bf16.mxu0 %v2321_v9 }
 0x77f   :  { %2117 = vmatpush3.bf16.msra.mxu0 %v2228_v14 }
 0x780   :  { %2122 = vmatprep.subr.bf16.mxu0 %v2321_v9 }
 0x84d   :  { %v827_v35 = vpop.f32.mrb[16].mxu0 }
 0x84e   :  { %v828_v36 = vadd.f32 %v1900_v34, %v827_v35  ;;  %v2100_v39 = vpop.f32.mrb[17].mxu0 }
 0x84f   :  { %v830_v40 = vpop.f32.mrb[18].mxu0 }
 0x850   :  { %v836_v41 = vmul.f32 0.044715, %v828_v36  ;;  %v831_v42 = vadd.f32 %v1900_v34, %v830_v40  ;;  %v2101_v43 = vpop.f32.mrb[19].mxu0  ;;  %v834_v57 = vmul.f32 0.5, %v828_v36 }
 0x852   :  { %v838_v44 = vmul.f32 %v836_v41, %v828_v36  ;;  %v837_v45 = vmul.f32 0.044715, %v831_v42  ;;  %v835_v60 = vmul.f32 0.5, %v831_v42 }
 0x854   :  { %v840_v46 = vmul.f32 %v838_v44, %v828_v36  ;;  %v839_v47 = vmul.f32 %v837_v45, %v831_v42 }
 0x856   :  { %v842_v48 = vadd.f32 %v840_v46, %v828_v36  ;;  %v841_v49 = vmul.f32 %v839_v47, %v831_v42  ;;  %v1917_v47 = vld [vmem:[%s2801_s4 + $0x1] ss:$0 sm:$0xff] }
 0x858   :  { %v844_v50 = vmul.f32 0.7978846, %v842_v48  ;;  %v843_v52 = vadd.f32 %v841_v49, %v831_v42  ;;  %v1911_v42 = vld [vmem:[%s2804_s7 + $0x3] ss:$0 sm:$0xff] }
 0x85a   :  { %2261 = vtanh.f32 %v844_v50  ;;  %v845_v53 = vmul.f32 0.7978846, %v843_v52 }
 0x85c   :  { %2263 = vtanh.f32 %v845_v53 }
 0x864   :  { %v2262_v54 = vpop.eup %2261 }
 0x865   :  { %v848_v55 = vadd.f32 1.0, %v2262_v54 }
 0x866   :  { %v2264_v56 = vpop.eup %2263 }
 0x867   :  { %v849_v61 = vadd.f32 1.0, %v2264_v56  ;;  %v850_v62 = vmul.f32 %v848_v55, %v834_v57 }
 0x869   :  { %v851_v63 = vmul.f32 %v849_v61, %v835_v60 }
 0x86b   :  { %v852_v0 = vpack.c.bf16 %v851_v63, %v850_v62 }
 0x86d   :  { %2111 = vmatmul.mubr.msk.bf16.vlgmr.msra.gmra.mrb[24].mxu1 %vm892_vm7, %v852_v0 }
 0x86e   :  { %2130 = vmatprep.mubr.msk.bf16.mxu1 %vm2322_vm1, %v2321_v9 }
 0x940   :  { %v930_v38 = vpop.f32.mrb[24].mxu1 }
 0x941   :  { %v931_v1 = vadd.f32 %v1904_v37, %v930_v38  ;;  %v2112_v2 = vpop.f32.mrb[25].mxu1 }
 0x942   :  { %v933_v3 = vpop.f32.mrb[26].mxu1 }
 0x943   :  { %v937_v4 = vadd.f32 %v931_v1, %v764_v27  ;;  %v934_v5 = vadd.f32 %v1904_v37, %v933_v3  ;;  %v2113_v59 = vpop.f32.mrb[27].mxu1 }
 0x945   :  { %v938_v6 = vadd.f32 %v934_v5, %v765_v28  ;;  %v941_v7 = vsel %vm47_vm0, %v937_v4, 0.0  ;;  %v949_v58 = vmul.f32 %v937_v4, %v937_v4 }
 0x946   :  { %942 = vadd.xlane.f32.xlu1 %v941_v7 }
 0x947   :  { %v944_v51 = vsel %vm47_vm0, %v938_v6, 0.0  ;;  %v950_v8 = vmul.f32 %v938_v6, %v938_v6  ;;  %v951_v11 = vsel %vm47_vm0, %v949_v58, 0.0 }
 0x948   :  { %945 = vadd.xlane.f32.xlu0 %v944_v51 }
 0x949   :  { %v954_v12 = vsel %vm47_vm0, %v950_v8, 0.0 }
 0x94a   :  { %952 = vadd.xlane.f32.xlu1 %v951_v11 }
 0x94c   :  { %955 = vadd.xlane.f32.xlu0 %v954_v12 }
 0x9d3   :  { %v943_v16 = vpop.xlane.xlu1 %942 }
 0x9d4   :  { %v947_v17 = vmul.f32 0.03125, %v943_v16 }
 0x9d5   :  { %v946_v18 = vpop.xlane.xlu0 %945 }
 0x9d6   :  { %v948_v19 = vmul.f32 0.03125, %v946_v18  ;;  %v959_v21 = vmul.f32 %v947_v17, %v947_v17  ;;  %v975_v34 = vsub.f32 %v937_v4, %v947_v17 }
 0x9d7   :  { %v953_v20 = vpop.xlane.xlu1 %952 }
 0x9d8   :  { %v957_v22 = vmul.f32 0.03125, %v953_v20  ;;  %v960_v24 = vmul.f32 %v948_v19, %v948_v19  ;;  %v976_v39 = vsub.f32 %v938_v6, %v948_v19 }
 0x9d9   :  { %v956_v23 = vpop.xlane.xlu0 %955 }
 0x9da   :  { %v961_v25 = vsub.f32 %v957_v22, %v959_v21  ;;  %v958_v26 = vmul.f32 0.03125, %v956_v23 }
 0x9dc   :  { %v963_v27 = vmax.f32 %v961_v25, 0.0  ;;  %v962_v28 = vsub.f32 %v958_v26, %v960_v24 }
 0x9de   :  { %v965_v29 = vadd.f32 1e-12, %v963_v27  ;;  %v964_v30 = vmax.f32 %v962_v28, 0.0 }
 0x9e0   :  { %2265 = vrsqrt.f32 %v965_v29  ;;  %v966_v31 = vadd.f32 1e-12, %v964_v30 }
 0x9e2   :  { %2267 = vrsqrt.f32 %v966_v31 }
 0x9ea   :  { %v2266_v33 = vpop.eup %2265 }
 0x9eb   :  { %v973_v35 = vmul.f32 %v2266_v33, %v1910_v32 }
 0x9ec   :  { %v2268_v36 = vpop.eup %2267 }
 0x9ed   :  { %v974_v40 = vmul.f32 %v2268_v36, %v1910_v32  ;;  %v977_v41 = vmul.f32 %v975_v34, %v973_v35 }
 0x9ef   :  { %v978_v43 = vmul.f32 %v976_v39, %v974_v40  ;;  %v2616_v44 = vadd.f32 %v1911_v42, %v977_v41 }
 0x9f1   :  { %v2618_v45 = vadd.f32 %v1911_v42, %v978_v43 }
 0x9f3   :  { %v985_v46 = vpack.c.bf16 %v2618_v45, %v2616_v44 }
 0x9f5   :  { %2119 = vmatmul.mubr.msk.bf16.vlgmr.msra.gmra.mrb[20].mxu0 %vm47_vm0, %v985_v46 }
 0x9f6   :  { %2124 = vmatprep.mubr.msk.bf16.mxu0 %vm2322_vm1, %v2321_v9 }
 0xac8   :  { %v1048_v48 = vpop.f32.mrb[20].mxu0 }
 0xac9   :  { %v1049_v49 = vadd.f32 %v1917_v47, %v1048_v48  ;;  %v2120_v50 = vpop.f32.mrb[21].mxu0 }
 0xaca   :  { %v1051_v52 = vpop.f32.mrb[22].mxu0 }
 0xacb   :  { %1055 = vst.msk [vmem:[#allocation2] sm:$0xff] %vm167_vm2, %v1049_v49  ;;  %v1052_v53 = vadd.f32 %v1917_v47, %v1051_v52  ;;  %v2121_v54 = vpop.f32.mrb[23].mxu0 }
 0xacd   :  { %1056 = vst.msk [vmem:[#allocation2 + $0x8] sm:$0xff] %vm167_vm2, %v1052_v53 }
 0xad2   :  { %v1057_v55 = vld [vmem:[#allocation2] sm:$0xff] }
 0xad3   :  { %v2630_v56 = vpack.c.bf16 %v1057_v55, %v1057_v55 }
 0xad4   :  { %v1058_v57 = vld [vmem:[#allocation2 + $0x8] sm:$0xff] }
 0xad5   :  { %1072 = vrot.lane.b32.xlu0 %v2630_v56, %s2323_s2  ;;  %v2212_v60 = vpack.i.bf16 %v1058_v57, %v1057_v55  ;;  %v2635_v61 = vpack.c.bf16 %v1058_v57, %v1058_v57 }
 0xad7   :  { %2213 = vrot.lane.b32.xlu1 %v2212_v60, %s2324_s16 }
 0xadb   :  { %1121 = vrot.lane.b32.xlu1 %v2635_v61, %s2323_s2 }
 0xb47   :  { %v1073_v62 = vpop.permute.xlu0 %1072 }
 0xb48   :  { %v1078_v63 = vsel %vm199_vm3, %v1073_v62, 0 }
 0xb49   :  { %2123 = vmatpush3.bf16.xpose.msra.mxu0 %v1078_v63  ;;  %v2214_v0 = vpop.permute.xlu1 %2213 }
 0xb4a   :  { %v2215_v37 = vunpack.i.l.bf16 %v2214_v0  ;;  %2134 = vmatprep.subr.bf16.mxu0 %v2321_v9  ;;  %v2216_v38 = vunpack.i.h.bf16 %v2214_v0 }
 0xb4c   :  { %v2641_v1 = vpack.c.bf16 %v2215_v37, %v2215_v37  ;;  %v2646_v4 = vpack.c.bf16 %v2216_v38, %v2216_v38 }
 0xb4d   :  { %v1122_v2 = vpop.permute.xlu1 %1121 }
 0xb4e   :  { %v1127_v3 = vsel %vm199_vm3, %v1122_v2, 0  ;;  %1170 = vrot.lane.b32.xlu1 %v2641_v1, %s2323_s2 }
 0xb4f   :  { %2129 = vmatpush3.bf16.xpose.msra.mxu1 %v1127_v3 }
 0xb50   :  { %2125 = vmatmul.mubr.msk.bf16.vlgmr.msra.gmra.mrb[24].mxu0 %vm199_vm3, %v2630_v56  ;;  %2140 = vmatprep.subr.bf16.mxu1 %v2321_v9 }
 0xb51   :  { %2136 = vmatprep.mubr.msk.bf16.mxu0 %vm2322_vm1, %v2321_v9 }
 0xb52   :  { %1219 = vrot.lane.b32.xlu1 %v2646_v4, %s2323_s2  ;;  %s2327_s2 = smov [#allocation4]  }
 0xb53   :  { %s1869_s16 = sshll.u32 %s2327_s2, 4  ;;  %s1870_s16 = int_to_ptr.vmem [resolvable:$true] %s1869_s16 }
 0xb54   :  { %p2302_p1 = scmp.lt.s32.totalorder %s1870_s16, %s1870_s16 }
 0xb56   :  { %2131 = vmatmul.mubr.msk.bf16.vlgmr.msra.gmra.mrb[28].mxu1 %vm199_vm3, %v2635_v61 }
 0xb57   :  { %2142 = vmatprep.mubr.msk.bf16.mxu1 %vm2322_vm1, %v2321_v9 }
 0xbc0   :  { %v1171_v5 = vpop.permute.xlu1 %1170 }
 0xbc1   :  { %v1176_v59 = vsel %vm199_vm3, %v1171_v5, 0 }
 0xbc2   :  { %2135 = vmatpush3.bf16.xpose.msra.mxu0 %v1176_v59 }
 0xbc3   :  { %2146 = vmatprep.subr.bf16.mxu0 %v2321_v9 }
 0xbc4   :  { %v1220_v6 = vpop.permute.xlu1 %1219 }
 0xbc5   :  { %v1225_v7 = vsel %vm199_vm3, %v1220_v6, 0 }
 0xbc6   :  { %2141 = vmatpush3.bf16.xpose.msra.mxu1 %v1225_v7 }
 0xbc7   :  { %2152 = vmatprep.subr.bf16.mxu1 %v2321_v9 }
 0xbc9   :  { %2137 = vmatmul.mubr.msk.bf16.vlgmr.msra.gmra.mrb[28].mxu0 %vm199_vm3, %v2641_v1 }
 0xbca   :  { %2148 = vmatprep.mubr.msk.bf16.mxu0 %vm2322_vm1, %v2321_v9 }
 0xbcd   :  { %2143 = vmatmul.mubr.msk.bf16.vlgmr.msra.gmra.mrb[32].mxu1 %vm199_vm3, %v2646_v4 }
 0xbce   :  { %2154 = vmatprep.mubr.msk.bf16.mxu1 %vm2322_vm1, %v2321_v9 }
 0xc23   :  { %v1114_v58 = vpop.f32.mrb[24].mxu0 }
 0xc24   :  { %v1115_v51 = vadd.f32 %v1114_v58, %v2486_v10  ;;  %v2126_v8 = vpop.f32.mrb[25].mxu0 }
 0xc25   :  { %v1117_v11 = vpop.f32.mrb[26].mxu0 }
 0xc26   :  { %v2127_v12 = vpop.f32.mrb[27].mxu0  ;;  %v1267_v13 = vsel %vm393_vm4, %v1115_v51, -inf }
 0xc27   :  { %1268 = vmax.xlane.f32.xlu0 %v1267_v13 }
 0xc29   :  { %v1163_v14 = vpop.f32.mrb[28].mxu1 }
 0xc2a   :  { %v1164_v16 = vadd.f32 %v1163_v14, %v2489_v15  ;;  %v2132_v17 = vpop.f32.mrb[29].mxu1 }
 0xc2b   :  { %v1166_v18 = vpop.f32.mrb[30].mxu1 }
 0xc2c   :  { %v2133_v19 = vpop.f32.mrb[31].mxu1  ;;  %v1270_v20 = vsel %vm393_vm4, %v1164_v16, -inf }
 0xc2d   :  { %1271 = vmax.xlane.f32.xlu1 %v1270_v20  ;;  %v2229_v20 = vld [vmem:[%s2802_s5 + $0x10] sm:$0xff]  }
 0xc9c   :  { %v1212_v21 = vpop.f32.mrb[28].mxu0 }
 0xc9d   :  { %v1213_v22 = vadd.f32 %v1212_v21, %v2486_v10  ;;  %v2138_v23 = vpop.f32.mrb[29].mxu0 }
 0xc9e   :  { %v1215_v24 = vpop.f32.mrb[30].mxu0  ;;  %v2230_v23 = vld [vmem:[%s2802_s5 + $0x18] sm:$0xff]  }
 0xc9f   :  { %v2139_v25 = vpop.f32.mrb[31].mxu0  ;;  %v1273_v26 = vsel %vm393_vm4, %v1213_v22, -inf }
 0xca0   :  { %1274 = vmax.xlane.f32.xlu0 %v1273_v26  ;;  %v1261_v27 = vpop.f32.mrb[32].mxu1 }
 0xca1   :  { %v1262_v28 = vadd.f32 %v1261_v27, %v2489_v15  ;;  %v2144_v29 = vpop.f32.mrb[33].mxu1 }
 0xca2   :  { %v1264_v30 = vpop.f32.mrb[34].mxu1 }
 0xca3   :  { %v2145_v31 = vpop.f32.mrb[35].mxu1  ;;  %v1276_v32 = vsel %vm393_vm4, %v1262_v28, -inf }
 0xca4   :  { %1277 = vmax.xlane.f32.xlu0 %v1276_v32 }
 0xcb4   :  { %v1269_v33 = vpop.xlane.xlu0 %1268 }
 0xcb5   :  { %v1279_v34 = vsub.f32 %v1115_v51, %v1269_v33 }
 0xcb7   :  { %v1283_v35 = vmul.f32 1.442695, %v1279_v34 }
 0xcb9   :  { %2269 = vpow2.f32 %v1283_v35 }
 0xcba   :  { %v1272_v10 = vpop.xlane.xlu1 %1271 }
 0xcbb   :  { %v1280_v36 = vsub.f32 %v1164_v16, %v1272_v10 }
 0xcbd   :  { %v1285_v39 = vmul.f32 1.442695, %v1280_v36 }
 0xcbf   :  { %2271 = vpow2.f32 %v1285_v39 }
 0xcc3   :  { %v2270_v40 = vpop.eup %2269 }
 0xcc4   :  { %v1291_v41 = vsel %vm393_vm4, %v2270_v40, 0.0 }
 0xcc5   :  { %1292 = vadd.xlane.f32.xlu0 %v1291_v41 }
 0xcc9   :  { %v2272_v42 = vpop.eup %2271 }
 0xcca   :  { %v1294_v15 = vsel %vm393_vm4, %v2272_v42, 0.0 }
 0xccb   :  { %1295 = vadd.xlane.f32.xlu1 %v1294_v15 }
 0xcdc   :  { %1363 = vrot.lane.b32.xlu1 %v2635_v61, %s2325_s1 }
 0xce0   :  { %1411 = vrot.lane.b32.xlu1 %v2641_v1, %s2325_s1 }
 0xd2d   :  { %v1275_v43 = vpop.xlane.xlu0 %1274 }
 0xd2e   :  { %v1281_v46 = vsub.f32 %v1213_v22, %v1275_v43 }
 0xd30   :  { %v1287_v47 = vmul.f32 1.442695, %v1281_v46 }
 0xd31   :  { %v1278_v48 = vpop.xlane.xlu0 %1277 }
 0xd32   :  { %2273 = vpow2.f32 %v1287_v47  ;;  %v1282_v49 = vsub.f32 %v1262_v28, %v1278_v48 }
 0xd34   :  { %v1289_v50 = vmul.f32 1.442695, %v1282_v49 }
 0xd36   :  { %2275 = vpow2.f32 %v1289_v50 }
 0xd3c   :  { %v2274_v52 = vpop.eup %2273 }
 0xd3d   :  { %v1297_v53 = vsel %vm393_vm4, %v2274_v52, 0.0 }
 0xd3e   :  { %1298 = vadd.xlane.f32.xlu0 %v1297_v53 }
 0xd40   :  { %v2276_v54 = vpop.eup %2275 }
 0xd41   :  { %v1300_v55 = vsel %vm393_vm4, %v2276_v54, 0.0 }
 0xd42   :  { %1301 = vadd.xlane.f32.xlu1 %v1300_v55 }
 0xd52   :  { %v1293_v37 = vpop.xlane.xlu0 %1292 }
 0xd53   :  { %1459 = vrot.lane.b32.xlu1 %v2646_v4, %s2325_s1 }
 0xd54   :  { %1315 = vrot.lane.b32.xlu0 %v2630_v56, %s2325_s1  ;;  %s2297_s1 = scalar_lea.vmem %s1870_s16, 256 }
 0xd55   :  { %p2298_p0 = scmp.ne.s32.totalorder %s1870_s16, %s2297_s1  ;;  %p2303_p2 = scmp.lt.s32.totalorder %s2297_s1, %s2297_s1 }
 0xd57   :  { %p2304_p3 = por %p2303_p2, %p2302_p1 }
 0xd58   :  { %v1296_v57 = vpop.xlane.xlu1 %1295 }
 0xd59   :  { %2277 = vrcp.f32 %v1296_v57  ;;  %p2305_p4 = pnand %p2304_p3, %p2298_p0 }
 0xd5a   :  { %2279 = vrcp.f32 %v1293_v37 }
 0xd5c   :  { %v1364_v60 = vpop.permute.xlu1 %1363 }
 0xd5d   :  { %v1369_v61 = vsel %vm447_vm5, %v1364_v60, 0 }
 0xd5e   :  { %2153 = vmatpush3.bf16.msra.mxu1 %v1369_v61 }
 0xd5f   :  { %2164 = vmatprep.subr.bf16.mxu1 %v2321_v9 }
 0xd60   :  { %v1412_v56 = vpop.permute.xlu1 %1411 }
 0xd61   :  { %v1417_v7 = vsel %vm447_vm5, %v1412_v56, 0 }
 0xd63   :  { %v2278_v62 = vpop.eup %2277 }
 0xd64   :  { %v1308_v63 = vmul.f32 %v2278_v62, %v2272_v42  ;;  %v2280_v38 = vpop.eup %2279 }
 0xd65   :  { %v1307_v2 = vmul.f32 %v2280_v38, %v2270_v40  ;;  %v1934_v40 = vld [vmem:[%s2803_s6 + $0x1] ss:$0 sm:$0xff] }
 0xd66   :  { %v1312_v0 = vpack.c.bf16 %v1308_v63, %v1308_v63 }
 0xd67   :  { %v1311_v59 = vpack.c.bf16 %v1307_v2, %v1307_v2 }
 0xd68   :  { %2155 = vmatmul.mubr.msk.bf16.vlgmr.msra.gmra.mrb[36].mxu1 %vm393_vm4, %v1312_v0 }
 0xd69   :  { %2166 = vmatprep.mubr.msk.bf16.mxu1 %vm2322_vm1, %v2321_v9 }
 0xdcb   :  { %v1299_v1 = vpop.xlane.xlu0 %1298 }
 0xdcc   :  { %2281 = vrcp.f32 %v1299_v1 }
 0xdcf   :  { %v1302_v3 = vpop.xlane.xlu1 %1301  ;;  %v1316_v4 = vpop.permute.xlu0 %1315 }
 0xdd0   :  { %2283 = vrcp.f32 %v1302_v3  ;;  %v1321_v5 = vsel %vm447_vm5, %v1316_v4, 0 }
 0xdd1   :  { %2147 = vmatpush3.bf16.msra.mxu0 %v1321_v5 }
 0xdd2   :  { %2158 = vmatprep.subr.bf16.mxu0 %v2321_v9 }
 0xdd3   :  { %v1460_v6 = vpop.permute.xlu1 %1459 }
 0xdd4   :  { %v1465_v58 = vsel %vm447_vm5, %v1460_v6, 0  ;;  %2149 = vmatmul.mubr.msk.bf16.vlgmr.msra.gmra.mrb[32].mxu0 %vm393_vm4, %v1311_v59 }
 0xdd5   :  { %2159 = vmatpush3.bf16.msra.mxu0 %v1417_v7  ;;  %2165 = vmatpush3.bf16.msra.mxu1 %v1465_v58  ;;  %v1940_v58 = vld [vmem:[%s2804_s7 + $0x4] ss:$0 sm:$0xff] }
 0xdd6   :  { %v2282_v51 = vpop.eup %2281  ;;  %2160 = vmatprep.mubr.msk.bf16.mxu0 %vm2322_vm1, %v2321_v9  ;;  %2170 = vmatprep.subr.bf16.mxu0 %v2321_v9 }
 0xdd7   :  { %v1309_v8 = vmul.f32 %v2282_v51, %v2274_v52  ;;  %2178 = vmatprep.subr.bf16.mxu1 %v2321_v9 }
 0xdd9   :  { %v1313_v11 = vpack.c.bf16 %v1309_v8, %v1309_v8 }
 0xdda   :  { %v2284_v12 = vpop.eup %2283 }
 0xddb   :  { %v1310_v13 = vmul.f32 %v2284_v12, %v2276_v54 }
 0xddc   :  { %2161 = vmatmul.mubr.msk.bf16.vlgmr.msra.gmra.mrb[36].mxu0 %vm393_vm4, %v1313_v11 }
 0xddd   :  { %v1314_v14 = vpack.c.bf16 %v1310_v13, %v1310_v13  ;;  %2174 = vmatprep.mubr.msk.bf16.mxu0 %vm2322_vm1, %v2321_v9  ;;  %2171 = vmatpush3.bf16.msra.mxu0 %v2229_v20 }
 0xdde   :  { %2172 = vmatprep.subr.bf16.mxu0 %v2321_v9 }
 0xddf   :  { %2167 = vmatmul.mubr.msk.bf16.vlgmr.msra.gmra.mrb[40].mxu1 %vm393_vm4, %v1314_v14 }
 0xde0   :  { %2182 = vmatprep.mubr.msk.bf16.mxu1 %vm2322_vm1, %v2321_v9 }
 0xde1   :  { %2173 = vmatpush3.bf16.msra.mxu0 %v2230_v23  ;;  %v2234_v23 = vld [vmem:[%s2807_s10 + $0x28] sm:$0xff]  }
 0xde2   :  { %2186 = vmatprep.subr.bf16.mxu0 %v2321_v9 }
 0xe3b   :  { %v1405_v16 = vpop.f32.mrb[36].mxu1 }
 0xe3c   :  { %1508 = vst.msk [vmem:[#allocation3 + $0x8] sm:$0xff] %vm199_vm3, %v1405_v16  ;;  %v2156_v17 = vpop.f32.mrb[37].mxu1 }
 0xe3d   :  { %v1408_v18 = vpop.f32.mrb[38].mxu1  ;;  %v1941_v17 = vld [vmem:[%s2804_s7 + $0x5] ss:$0 sm:$0xff] }
 0xe3e   :  { %v2157_v19 = vpop.f32.mrb[39].mxu1 }
 0xea7   :  { %v1357_v21 = vpop.f32.mrb[32].mxu0 }
 0xea8   :  { %1507 = vst.msk [vmem:[#allocation3] sm:$0xff] %vm199_vm3, %v1357_v21  ;;  %v2150_v22 = vpop.f32.mrb[33].mxu0 }
 0xea9   :  { %v1360_v24 = vpop.f32.mrb[34].mxu0  ;;  %v2233_v22 = vld [vmem:[%s2807_s10 + $0x20] sm:$0xff]  }
 0xeaa   :  { %v2151_v25 = vpop.f32.mrb[35].mxu0  ;;  %v2235_v24 = vld [vmem:[%s2807_s10 + $0x30] sm:$0xff]  }
 0xeab   :  { %v2236_v25 = vld [vmem:[%s2807_s10 + $0x38] sm:$0xff]  }
 0xeaf   :  { %v1453_v26 = vpop.f32.mrb[36].mxu0 }
 0xeb0   :  { %1511 = vrot.lane.b32.xlu0 %v1453_v26, %s2326_s25  ;;  %v2162_v27 = vpop.f32.mrb[37].mxu0  ;;  %v1947_v26 = vld [vmem:[%s2806_s9 + $0x1] ss:$0 sm:$0xff] }
 0xeb1   :  { %v1456_v28 = vpop.f32.mrb[38].mxu0 }
 0xeb2   :  { %v2163_v29 = vpop.f32.mrb[39].mxu0  ;;  %v1501_v30 = vpop.f32.mrb[40].mxu1 }
 0xeb3   :  { %1513 = vrot.lane.b32.xlu1 %v1501_v30, %s2326_s25  ;;  %v2168_v31 = vpop.f32.mrb[41].mxu1 }
 0xeb4   :  { %v1504_v32 = vpop.f32.mrb[42].mxu1 }
 0xeb5   :  { %v2169_v33 = vpop.f32.mrb[43].mxu1 }
 0xf22   :  { %v1512_v34 = vpop.permute.xlu0 %1511 }
 0xf23   :  { %1517 = vst.msk [vmem:[#allocation3] sm:$0xff] %vm645_vm6, %v1512_v34 }
 0xf25   :  { %v1514_v35 = vpop.permute.xlu1 %1513 }
 0xf26   :  { %1518 = vst.msk [vmem:[#allocation3 + $0x8] sm:$0xff] %vm645_vm6, %v1514_v35 }
 0xf2a   :  { %v1519_v10 = vld [vmem:[#allocation3] sm:$0xff] }
 0xf2d   :  { %v1520_v36 = vld [vmem:[#allocation3 + $0x8] sm:$0xff] }
 0xf2e   :  { %v1521_v39 = vpack.c.bf16 %v1520_v36, %v1519_v10 }
 0xf30   :  { %2175 = vmatmul.mubr.msk.bf16.vlgmr.msra.gmra.mrb[40].mxu0 %vm47_vm0, %v1521_v39 }
 0xf31   :  { %2194 = vmatprep.mubr.msk.bf16.mxu0 %vm2322_vm1, %v2321_v9  ;;  %2187 = vmatpush3.bf16.msra.mxu0 %v2233_v22 }
 0xf32   :  { %2188 = vmatprep.subr.bf16.mxu0 %v2321_v9 }
 0xf35   :  { %2189 = vmatpush3.bf16.msra.mxu0 %v2234_v23 }
 0xf36   :  { %2190 = vmatprep.subr.bf16.mxu0 %v2321_v9 }
 0xf39   :  { %2191 = vmatpush3.bf16.msra.mxu0 %v2235_v24  ;;  %v1969_v24 = vld [vmem:[%s2804_s7 + $0x7] ss:$0 sm:$0xff] }
 0xf3a   :  { %2192 = vmatprep.subr.bf16.mxu0 %v2321_v9 }
 0xf3d   :  { %2193 = vmatpush3.bf16.msra.mxu0 %v2236_v25 }
0x1003   :  { %v1584_v41 = vpop.f32.mrb[40].mxu0 }
0x1004   :  { %v1585_v42 = vadd.f32 %v1934_v40, %v1584_v41  ;;  %v2176_v15 = vpop.f32.mrb[41].mxu0 }
0x1005   :  { %v1587_v43 = vpop.f32.mrb[42].mxu0 }
0x1006   :  { %v1591_v46 = vadd.f32 %v1585_v42, %v2616_v44  ;;  %v1588_v47 = vadd.f32 %v1934_v40, %v1587_v43  ;;  %v2177_v48 = vpop.f32.mrb[43].mxu0  ;;  %v2231_v44 = vld [vmem:[%s2805_s8 + $0x10] sm:$0xff]  }
0x1007   :  { %2179 = vmatpush3.bf16.msra.mxu1 %v2231_v44 }
0x1008   :  { %v1592_v49 = vadd.f32 %v1588_v47, %v2618_v45  ;;  %v1596_v50 = vsel %vm47_vm0, %v1591_v46, 0.0  ;;  %v1604_v52 = vmul.f32 %v1591_v46, %v1591_v46  ;;  %v2232_v45 = vld [vmem:[%s2805_s8 + $0x18] sm:$0xff]   ;;  %2180 = vmatprep.subr.bf16.mxu1 %v2321_v9 }
0x1009   :  { %1597 = vadd.xlane.f32.xlu0 %v1596_v50 }
0x100a   :  { %v1599_v53 = vsel %vm47_vm0, %v1592_v49, 0.0  ;;  %v1606_v54 = vsel %vm47_vm0, %v1604_v52, 0.0  ;;  %v1605_v55 = vmul.f32 %v1592_v49, %v1592_v49 }
0x100b   :  { %1600 = vadd.xlane.f32.xlu1 %v1599_v53  ;;  %2181 = vmatpush3.bf16.msra.mxu1 %v2232_v45 }
0x100c   :  { %v1609_v57 = vsel %vm47_vm0, %v1605_v55, 0.0 }
0x100d   :  { %1607 = vadd.xlane.f32.xlu0 %v1606_v54  ;;  %v1960_v54 = vld [vmem:[%s2808_s11 + $0x1] ss:$0 sm:$0xff] }
0x1011   :  { %1610 = vadd.xlane.f32.xlu0 %v1609_v57 }
0x1096   :  { %v1598_v60 = vpop.xlane.xlu0 %1597 }
0x1097   :  { %v1602_v61 = vmul.f32 0.03125, %v1598_v60 }
0x1098   :  { %v1601_v62 = vpop.xlane.xlu1 %1600 }
0x1099   :  { %v1614_v0 = vmul.f32 %v1602_v61, %v1602_v61  ;;  %v1603_v37 = vmul.f32 0.03125, %v1601_v62  ;;  %v1630_v11 = vsub.f32 %v1591_v46, %v1602_v61 }
0x109a   :  { %v1608_v63 = vpop.xlane.xlu0 %1607 }
0x109b   :  { %v1612_v38 = vmul.f32 0.03125, %v1608_v63  ;;  %v1615_v2 = vmul.f32 %v1603_v37, %v1603_v37  ;;  %v1631_v13 = vsub.f32 %v1592_v49, %v1603_v37 }
0x109d   :  { %v1616_v56 = vsub.f32 %v1612_v38, %v1614_v0 }
0x109e   :  { %v1611_v1 = vpop.xlane.xlu0 %1610 }
0x109f   :  { %v1618_v3 = vmax.f32 %v1616_v56, 0.0  ;;  %v1613_v4 = vmul.f32 0.03125, %v1611_v1 }
0x10a1   :  { %v1620_v5 = vadd.f32 1e-12, %v1618_v3  ;;  %v1617_v59 = vsub.f32 %v1613_v4, %v1615_v2 }
0x10a3   :  { %2285 = vrsqrt.f32 %v1620_v5  ;;  %v1619_v6 = vmax.f32 %v1617_v59, 0.0 }
0x10a5   :  { %v1621_v7 = vadd.f32 1e-12, %v1619_v6 }
0x10a7   :  { %2287 = vrsqrt.f32 %v1621_v7 }
0x10ad   :  { %v2286_v51 = vpop.eup %2285 }
0x10ae   :  { %v1628_v8 = vmul.f32 %v2286_v51, %v1940_v58 }
0x10b0   :  { %v1632_v16 = vmul.f32 %v1630_v11, %v1628_v8 }
0x10b1   :  { %v2288_v12 = vpop.eup %2287 }
0x10b2   :  { %v1629_v14 = vmul.f32 %v2288_v12, %v1940_v58  ;;  %v1638_v19 = vadd.f32 %v1941_v17, %v1632_v16 }
0x10b4   :  { %v1633_v18 = vmul.f32 %v1631_v13, %v1629_v14 }
0x10b6   :  { %v1639_v20 = vadd.f32 %v1941_v17, %v1633_v18 }
0x10b8   :  { %v1640_v21 = vpack.c.bf16 %v1639_v20, %v1638_v19 }
0x10ba   :  { %2183 = vmatmul.mubr.msk.bf16.vlgmr.msra.gmra.mrb[44].mxu1 %vm47_vm0, %v1640_v21 }
0x118d   :  { %v1703_v27 = vpop.f32.mrb[44].mxu1 }
0x118e   :  { %v1704_v28 = vadd.f32 %v1947_v26, %v1703_v27  ;;  %v2184_v29 = vpop.f32.mrb[45].mxu1 }
0x118f   :  { %v1706_v30 = vpop.f32.mrb[46].mxu1 }
0x1190   :  { %v1712_v31 = vmul.f32 0.044715, %v1704_v28  ;;  %v1707_v32 = vadd.f32 %v1947_v26, %v1706_v30  ;;  %v2185_v33 = vpop.f32.mrb[47].mxu1  ;;  %v1710_v47 = vmul.f32 0.5, %v1704_v28 }
0x1192   :  { %v1714_v34 = vmul.f32 %v1712_v31, %v1704_v28  ;;  %v1713_v35 = vmul.f32 0.044715, %v1707_v32  ;;  %v1711_v48 = vmul.f32 0.5, %v1707_v32 }
0x1194   :  { %v1716_v10 = vmul.f32 %v1714_v34, %v1704_v28  ;;  %v1715_v36 = vmul.f32 %v1713_v35, %v1707_v32 }
0x1196   :  { %v1718_v39 = vadd.f32 %v1716_v10, %v1704_v28  ;;  %v1717_v40 = vmul.f32 %v1715_v36, %v1707_v32 }
0x1198   :  { %v1720_v41 = vmul.f32 0.7978846, %v1718_v39  ;;  %v1719_v9 = vadd.f32 %v1717_v40, %v1707_v32 }
0x119a   :  { %2289 = vtanh.f32 %v1720_v41  ;;  %v1721_v42 = vmul.f32 0.7978846, %v1719_v9 }
0x119c   :  { %2291 = vtanh.f32 %v1721_v42 }
0x11a4   :  { %v2290_v15 = vpop.eup %2289 }
0x11a5   :  { %v1724_v43 = vadd.f32 1.0, %v2290_v15 }
0x11a6   :  { %v2292_v46 = vpop.eup %2291 }
0x11a7   :  { %v1725_v49 = vadd.f32 1.0, %v2292_v46  ;;  %v1726_v50 = vmul.f32 %v1724_v43, %v1710_v47 }
0x11a9   :  { %v1727_v52 = vmul.f32 %v1725_v49, %v1711_v48 }
0x11ab   :  { %v1728_v53 = vpack.c.bf16 %v1727_v52, %v1726_v50 }
0x11ad   :  { %2195 = vmatmul.mubr.msk.bf16.vlgmr.msra.gmra.mrb[44].mxu0 %vm892_vm7, %v1728_v53 }
0x1280   :  { %v1807_v55 = vpop.f32.mrb[44].mxu0 }
0x1281   :  { %v1808_v57 = vadd.f32 %v1960_v54, %v1807_v55  ;;  %v2196_v44 = vpop.f32.mrb[45].mxu0 }
0x1282   :  { %v1810_v45 = vpop.f32.mrb[46].mxu0 }
0x1283   :  { %v1814_v60 = vadd.f32 %v1808_v57, %v1638_v19  ;;  %v1811_v61 = vadd.f32 %v1960_v54, %v1810_v45  ;;  %v2197_v62 = vpop.f32.mrb[47].mxu0  ;;  %v1968_v19 = vld [vmem:[%s2804_s7 + $0x6] ss:$0 sm:$0xff] }
0x1285   :  { %v1815_v63 = vadd.f32 %v1811_v61, %v1639_v20  ;;  %v1818_v0 = vsel %vm47_vm0, %v1814_v60, 0.0  ;;  %v1826_v37 = vmul.f32 %v1814_v60, %v1814_v60 }
0x1286   :  { %1819 = vadd.xlane.f32.xlu0 %v1818_v0 }
0x1287   :  { %v1821_v38 = vsel %vm47_vm0, %v1815_v63, 0.0  ;;  %v1827_v56 = vmul.f32 %v1815_v63, %v1815_v63  ;;  %v1828_v1 = vsel %vm47_vm0, %v1826_v37, 0.0 }
0x1288   :  { %1822 = vadd.xlane.f32.xlu1 %v1821_v38 }
0x1289   :  { %v1831_v2 = vsel %vm47_vm0, %v1827_v56, 0.0 }
0x128a   :  { %1829 = vadd.xlane.f32.xlu0 %v1828_v1 }
0x128c   :  { %1832 = vadd.xlane.f32.xlu1 %v1831_v2 }
0x1313   :  { %v1820_v3 = vpop.xlane.xlu0 %1819 }
0x1314   :  { %v1824_v4 = vmul.f32 0.03125, %v1820_v3 }
0x1315   :  { %v1823_v5 = vpop.xlane.xlu1 %1822 }
0x1316   :  { %v1825_v59 = vmul.f32 0.03125, %v1823_v5  ;;  %v1836_v7 = vmul.f32 %v1824_v4, %v1824_v4  ;;  %v1852_v21 = vsub.f32 %v1814_v60, %v1824_v4 }
0x1317   :  { %v1830_v6 = vpop.xlane.xlu0 %1829 }
0x1318   :  { %v1834_v58 = vmul.f32 0.03125, %v1830_v6  ;;  %v1837_v8 = vmul.f32 %v1825_v59, %v1825_v59  ;;  %v1853_v25 = vsub.f32 %v1815_v63, %v1825_v59 }
0x1319   :  { %v1833_v51 = vpop.xlane.xlu1 %1832 }
0x131a   :  { %v1838_v11 = vsub.f32 %v1834_v58, %v1836_v7  ;;  %v1835_v12 = vmul.f32 0.03125, %v1833_v51 }
0x131c   :  { %v1840_v13 = vmax.f32 %v1838_v11, 0.0  ;;  %v1839_v14 = vsub.f32 %v1835_v12, %v1837_v8 }
0x131e   :  { %v1842_v16 = vadd.f32 1e-12, %v1840_v13  ;;  %v1841_v17 = vmax.f32 %v1839_v14, 0.0 }
0x1320   :  { %2293 = vrsqrt.f32 %v1842_v16  ;;  %v1843_v18 = vadd.f32 1e-12, %v1841_v17 }
0x1322   :  { %2295 = vrsqrt.f32 %v1843_v18 }
0x132a   :  { %v2294_v20 = vpop.eup %2293 }
0x132b   :  { %v1850_v22 = vmul.f32 %v2294_v20, %v1968_v19 }
0x132c   :  { %v2296_v23 = vpop.eup %2295 }
0x132d   :  { %v1851_v26 = vmul.f32 %v2296_v23, %v1968_v19  ;;  %v1854_v27 = vmul.f32 %v1852_v21, %v1850_v22 }
0x132f   :  { %v1855_v28 = vmul.f32 %v1853_v25, %v1851_v26  ;;  %v1860_v29 = vadd.f32 %v1969_v24, %v1854_v27 }
0x1331   :  { %v1861_v30 = vadd.f32 %v1969_v24, %v1855_v28  ;;  %1862 = vst.msk [vmem:[#allocation4] sm:$0xff] %vm47_vm0, %v1860_v29 }
0x1333   :  { %1863 = vst.msk [vmem:[#allocation4 + $0x8] sm:$0xff] %vm47_vm0, %v1861_v30 }
0x1334   :  { %2308 = shalt.err (!%p2305_p4)
}
0x1335   :  { %s2309_s22 = scalar_lea.hbm %s2809_s12, 256 }
0x1336   :  { %p2310_p5 = scmp.ne.s32.totalorder %s2809_s12, %s2309_s22  ;;  %p2313_p6 = scmp.lt.u32.totalorder %s2309_s22, %s2809_s12 }
0x1338   :  { %p2315_p7 = pnand %p2313_p6, %p2310_p5 }
0x133a   :  { %2318 = shalt.err (!%p2315_p7)
}
0x133b   :  { %s2328_s8 = smov 128   ;;  %s2329_s26 = smov 8  }
0x133c   :  { %1875 = dma.vmem_to_hbm [thread:$0]  %s1870_s16, 256, %s2809_s12, [#allocation5], %s2328_s8, %s2328_s8, %s2329_s26  }
0x133d   :  { %2319 = dma.done.wait [#allocation5], 256  }
0x133e   :  { %2320 = vsyncadd [#allocation5], 4294967040 }
0x133f   :  { %1879 = vsyncpa [#allocation5], 1 }

</bundles_post_ra>
